<compile_context>
chip_gen: v5e
topology: v5e:2x2
jax: 0.10.0
libtpu: 0.0.40
codegen_flags: <defaults>
</compile_context>

<pallas_src>
import functools

import jax
import jax.numpy as jnp
from jax.experimental import pallas as pl
from jax.experimental.pallas import tpu as pltpu


_VMEM_LIMIT = 32 * 1024 * 1024  # safe on v5e / v6e / v7x


# ----------------------------------------------------------------------------
# Small helpers
# ----------------------------------------------------------------------------
def _conv_out(h):
    """Output size of a 3x3 / stride-2 / pad-1 conv."""
    return (h - 1) // 2 + 1


def _round8(n):
    return -(-n // 8) * 8


def _pick_batch_block(batch):
    """Largest batch block that still leaves >= 2 grid steps (megacore on v7x)."""
    for bb in (8, 4, 2, 1):
        if batch % bb == 0 and batch // bb >= 2:
            return bb, batch // bb
    return batch, 1


def _full_spec(arr):
    nd = arr.ndim
    return pl.BlockSpec(arr.shape, lambda *_: (0,) * nd)


# ----------------------------------------------------------------------------
# Wrapper-side conv1 im2col, laid out in conv2's tap order
# ----------------------------------------------------------------------------
def _build_conv1_patches(image_nchw, ho1, wo1, h2p, w2p, rpb, k1pad):
    """Returns (patches, mask).

    patches : (B, 4*rpb, k1pad) bf16.  Row (blk, a*w2p + b) with blk = r*2 + s
              holds the conv1 im2col patch for conv1-output position
              (u, v) = (2a + r - 1, 2b + s - 1) when that position exists,
              zeros otherwise -- i.e. rows are ordered exactly as conv2's
              zero-padded input in 2x2-parity "tap layout".
    mask    : (4*rpb, 1) f32, 1.0 on valid conv1-output rows, 0.0 elsewhere
              (kills ReLU(bias) leakage on the conv2 padding ring).
    """
    B, C, H, W = image_nchw.shape
    x = jnp.transpose(image_nchw, (0, 2, 3, 1)).astype(jnp.float32)   # NHWC
    xp = jnp.pad(x, ((0, 0), (1, 1), (1, 1), (0, 0)))
    cols = [xp[:, dy:dy + 2 * ho1:2, dx:dx + 2 * wo1:2, :]
            for dy in range(3) for dx in range(3)]
    col = jnp.concatenate(cols, axis=-1)                              # (B, ho1, wo1, 9C)
    k1 = 9 * C

    pblocks, mblocks = [], []
    for r in (0, 1):
        for s in (0, 1):
            blk = col[:, (1 - r)::2, (1 - s)::2, :]                   # (B, ho1/2, wo1/2, k1)
            blk = jnp.pad(blk, ((0, 0), (1 - r, r), (1 - s, s), (0, 0)))
            pblocks.append(blk.reshape(B, h2p * w2p, k1))
            m = jnp.pad(jnp.ones((ho1 // 2, wo1 // 2), jnp.float32),
                        ((1 - r, r), (1 - s, s)))
            mblocks.append(m.reshape(h2p * w2p))

    patches = jnp.stack(pblocks, axis=1)                              # (B, 4, h2p*w2p, k1)
    patches = jnp.pad(patches, ((0, 0), (0, 0),
                                (0, rpb - h2p * w2p), (0, k1pad - k1)))
    patches = patches.reshape(B, 4 * rpb, k1pad).astype(jnp.bfloat16)

    mask = jnp.stack(mblocks, axis=0)                                 # (4, h2p*w2p)
    mask = jnp.pad(mask, ((0, 0), (0, rpb - h2p * w2p))).reshape(4 * rpb, 1)
    return patches, mask


# ----------------------------------------------------------------------------
# The fused Pallas kernel
# ----------------------------------------------------------------------------
def _agent_kernel(patches_ref, state_ref, mask_ref,
                  w1_ref, b1_ref, w2_ref, b2_ref,
                  fcw_ref, fcb_ref, l1w_ref, l1b_ref,
                  l2w_ref, l2b_ref, mw_ref, mb_ref, ow_ref, ob_ref,
                  o_ref, y1_s,
                  *, bb, w2p, ho2, wo2, rpb):
    rows = 4 * rpb                      # conv2-tap-layout rows per batch element
    span = (ho2 - 1) * w2p + wo2        # contiguous rows covering one conv2 tap
    c1 = w1_ref.shape[1]                # 128 (padded conv1 cout)
    c2 = w2_ref.shape[2]                # 256
    k1pad = patches_ref.shape[-1]

    # ---- conv1: single im2col matmul over the whole batch block + ReLU ------
    p = patches_ref[...].reshape(bb * rows, k1pad)                    # bf16
    y1 = jnp.dot(p, w1_ref[...], preferred_element_type=jnp.float32)  # (bb*rows, c1)
    y1 = jnp.maximum(y1 + b1_ref[...], 0.0)
    y1 = y1.reshape(bb, rows, c1) * mask_ref[...].reshape(1, rows, 1)
    y1_s[...] = y1.astype(jnp.bfloat16)          # bf16 inter-conv activation

    # ---- conv2 (9 accumulated taps) + ReLU + MXU global-average pool --------
    off = jax.lax.broadcasted_iota(jnp.int32, (1, span), 1)
    pool_row = jnp.where(off % w2p < wo2, 1.0 / (ho2 * wo2), 0.0).astype(jnp.float32)

    feats = []
    for b in range(bb):
        acc = jnp.zeros((span, c2), jnp.float32)
        for dy in range(3):
            ay, by = dy // 2, dy % 2
            for dx in range(3):
                ax, bx = dx // 2, dx % 2
                start = (by * 2 + bx) * rpb + ay * w2p + ax
                tap = y1_s[b, start:start + span, :]                  # (span, c1) bf16
                acc = acc + jnp.dot(tap, w2_ref[dy * 3 + dx],
                                    preferred_element_type=jnp.float32)
        y2 = jnp.maximum(acc + b2_ref[...], 0.0)                      # (span, c2) f32
        feats.append(jnp.dot(pool_row, y2,
                             preferred_element_type=jnp.float32))     # (1, c2)
    feat = jnp.concatenate(feats, axis=0) if bb > 1 else feats[0]     # (bb, c2)

    # ---- fused heads: fc/l1/l2 + model + lv/av + dual softmax ---------------
    def dense(x, w_ref, b_ref):
        return jnp.dot(x.astype(jnp.bfloat16), w_ref[...],
                       preferred_element_type=jnp.float32) + b_ref[...]

    st = state_ref[...].reshape(bb, state_ref.shape[-1])
    out1 = jnp.tanh(dense(feat, fcw_ref, fcb_ref))                    # (bb, 256)
    out2 = jnp.tanh(dense(st, l1w_ref, l1b_ref))                      # (bb, 256)
    h = jnp.tanh(dense(out1 + out2, l2w_ref, l2b_ref))                # (bb, 128); cols 100+ == 0
    m = jnp.tanh(dense(h, mw_ref, mb_ref))                            # (bb, 128); cols 50+  == 0
    logits = dense(m, ow_ref, ob_ref)                                 # (bb, 10) = [lv | av]

    # two 5-wide softmaxes on one lane block (exact normalization)
    lane = jax.lax.broadcasted_iota(jnp.int32, logits.shape, 1)
    left = lane < 5
    neg = jnp.float32(-1e30)
    m_l = jnp.max(jnp.where(left, logits, neg), axis=-1, keepdims=True)
    m_r = jnp.max(jnp.where(left, neg, logits), axis=-1, keepdims=True)
    e = jnp.exp(logits - jnp.where(left, m_l, m_r))
    s_l = jnp.sum(jnp.where(left, e, 0.0), axis=-1, keepdims=True)
    s_r = jnp.sum(jnp.where(left, 0.0, e), axis=-1, keepdims=True)
    probs = e / jnp.where(left, s_l, s_r)
    o_ref[...] = probs.reshape(o_ref.shape)


# ----------------------------------------------------------------------------
# Forward pass (Agent)
# ----------------------------------------------------------------------------
def agent_forward(kp, image_nchw, env_state):
    B, C, H, W = image_nchw.shape
    S = env_state.shape[-1]
    k1pad, c1 = kp["conv1_w"].shape          # (64, 128)
    c2 = kp["conv2_w"].shape[2]              # 256

    ho1, wo1 = _conv_out(H), _conv_out(W)
    # TODO(synk): generalize the 2x2-parity tap layout to odd conv1 output sizes.
    assert ho1 % 2 == 0 and wo1 % 2 == 0, "conv1 output must be even-sized"
    ho2, wo2 = _conv_out(ho1), _conv_out(wo1)
    h2p, w2p = ho1 // 2 + 1, wo1 // 2 + 1    # conv2 padded-input parity-block dims
    rpb = _round8(h2p * w2p)                 # rows per parity block (sublane padded)
    rows = 4 * rpb
    span = (ho2 - 1) * w2p + wo2

    patches, mask = _build_conv1_patches(image_nchw, ho1, wo1, h2p, w2p, rpb, k1pad)
    state = env_state.astype(jnp.float32).reshape(B, 1, S)

    bb, nb = _pick_batch_block(B)

    weight_names = ("conv1_w", "conv1_b", "conv2_w", "conv2_b",
                    "fc_w", "fc_b", "l1_w", "l1_b", "l2_w", "l2_b",
                    "m_w", "m_b", "out_w", "out_b")
    weights = [kp[n] for n in weight_names]

    flops = (2 * B * rows * k1pad * c1
             + 2 * B * 9 * span * c1 * c2
             + 2 * B * span * c2
             + 2 * B * (c2 * c2 + S * c2 + c2 * 128 + 128 * 128 + 128 * 10))
    transcendentals = B * (c2 + c2 + 128 + 128 + 10)
    bytes_accessed = (sum(int(a.size) * a.dtype.itemsize
                          for a in ([patches, state, mask] + weights))
                      + B * 10 * 4)

    out = pl.pallas_call(
        functools.partial(_agent_kernel, bb=bb, w2p=w2p, ho2=ho2, wo2=wo2, rpb=rpb),
        out_shape=jax.ShapeDtypeStruct((B, 1, 10), jnp.float32),
        grid=(nb,),
        in_specs=[
            pl.BlockSpec((bb, rows, k1pad), lambda i: (i, 0, 0)),
            pl.BlockSpec((bb, 1, S), lambda i: (i, 0, 0)),
            pl.BlockSpec((rows, 1), lambda *_: (0, 0)),
        ] + [_full_spec(w) for w in weights],
        out_specs=pl.BlockSpec((bb, 1, 10), lambda i: (i, 0, 0)),
        scratch_shapes=[pltpu.VMEM((bb, rows, c1), jnp.bfloat16)],
        compiler_params=pltpu.CompilerParams(
            dimension_semantics=("parallel",),     # megacore sharding on v7x
            vmem_limit_bytes=_VMEM_LIMIT),
        cost_estimate=pl.CostEstimate(
            flops=flops, transcendentals=transcendentals,
            bytes_accessed=bytes_accessed),
    )(patches, state, mask, *weights)
    return out.reshape(B, 10)


# ----------------------------------------------------------------------------
# Parameter init (deterministic, synthetic) + kernel-layout preparation
# ----------------------------------------------------------------------------
def _dense_init(key, fan_in, fan_out):
    kw, kb = jax.random.split(key)
    lim = 1.0 / jnp.sqrt(jnp.float32(fan_in))
    w = jax.random.uniform(kw, (fan_in, fan_out), jnp.float32, -lim, lim)
    b = jax.random.uniform(kb, (1, fan_out), jnp.float32, -lim, lim)
    return w, b


def _conv_init(key, kh, kw, cin, cout):
    kk, kb = jax.random.split(key)
    fan_in = kh * kw * cin
    lim = 1.0 / jnp.sqrt(jnp.float32(fan_in))
    w = jax.random.uniform(kk, (kh, kw, cin, cout), jnp.float32, -lim, lim)
    b = jax.random.uniform(kb, (1, cout), jnp.float32, -lim, lim)
    return w, b


def init_agent_params(key, in_channels, state_dim):
    keys = jax.random.split(key, 8)
    cnn_nc = 256
    p = {}
    p["conv1_w"], p["conv1_b"] = _conv_init(keys[0], 3, 3, in_channels, 64)
    p["conv2_w"], p["conv2_b"] = _conv_init(keys[1], 3, 3, 64, cnn_nc)
    p["fc_w"], p["fc_b"] = _dense_init(keys[2], cnn_nc, cnn_nc)      # Linear(256,256)+Tanh
    p["l1_w"], p["l1_b"] = _dense_init(keys[3], state_dim, cnn_nc)   # Linear(state,256)+Tanh
    p["l2_w"], p["l2_b"] = _dense_init(keys[4], cnn_nc, 100)         # Linear(256,100)+Tanh
    p["m_w"], p["m_b"] = _dense_init(keys[5], 100, 50)               # Linear(100,50)+Tanh
    p["lv_w"], p["lv_b"] = _dense_init(keys[6], 50, 5)               # Linear(50,5)
    p["av_w"], p["av_b"] = _dense_init(keys[7], 50, 5)               # Linear(50,5)
    return p


def prepare_params(p):
    """Kernel-ready params: im2col conv1 weights, lane-dense padding, bf16 MXU operands.

    All padded rows/cols carry exact zeros, so the padded math equals the
    unpadded reference."""
    def pad_to(x, shape):
        return jnp.pad(x, [(0, t - s) for s, t in zip(x.shape, shape)])

    cin = p["conv1_w"].shape[2]
    k1 = 9 * cin
    k1pad = max(64, -(-k1 // 16) * 16)

    kp = {}
    # conv1: (3,3,cin,64) -> im2col (9*cin, 64); K pad -> k1pad, cout pad 64 -> 128
    kp["conv1_w"] = pad_to(p["conv1_w"].reshape(k1, 64), (k1pad, 128)).astype(jnp.bfloat16)
    kp["conv1_b"] = pad_to(p["conv1_b"], (1, 128))
    # conv2: cin 64 -> 128 (matches padded conv1 output; padded channels are zero)
    kp["conv2_w"] = pad_to(p["conv2_w"], (3, 3, 128, 256)).reshape(9, 128, 256).astype(jnp.bfloat16)
    kp["conv2_b"] = p["conv2_b"]
    # heads: 100 -> 128 and 50 -> 128 zero padding; fuse lv/av into one matmul
    kp["fc_w"] = p["fc_w"].astype(jnp.bfloat16)
    kp["fc_b"] = p["fc_b"]
    kp["l1_w"] = p["l1_w"].astype(jnp.bfloat16)
    kp["l1_b"] = p["l1_b"]
    kp["l2_w"] = pad_to(p["l2_w"], (256, 128)).astype(jnp.bfloat16)
    kp["l2_b"] = pad_to(p["l2_b"], (1, 128))
    kp["m_w"] = pad_to(p["m_w"], (128, 128)).astype(jnp.bfloat16)
    kp["m_b"] = pad_to(p["m_b"], (1, 128))
    kp["out_w"] = pad_to(jnp.concatenate([p["lv_w"], p["av_w"]], axis=1),
                         (128, 10)).astype(jnp.bfloat16)
    kp["out_b"] = jnp.concatenate([p["lv_b"], p["av_b"]], axis=1)
    return kp


# ----------------------------------------------------------------------------
# Pure-JAX reference (same synthetic backbone, f32 everywhere)
# ----------------------------------------------------------------------------
def _reference_forward(p, image_nchw, env_state):
    def conv(x, w, b):
        B, H, W, C = x.shape
        kh, kw, _, co = w.shape
        xp = jnp.pad(x, ((0, 0), (1, 1), (1, 1), (0, 0)))
        Ho, Wo = _conv_out(H), _conv_out(W)
        cols = [xp[:, dy:dy + 2 * Ho:2, dx:dx + 2 * Wo:2, :]
                for dy in range(kh) for dx in range(kw)]
        col = jnp.concatenate(cols, axis=-1).reshape(B * Ho * Wo, kh * kw * C)
        y = jnp.maximum(col @ w.reshape(kh * kw * C, co) + b, 0.0)
        return y.reshape(B, Ho, Wo, co)

    x = jnp.transpose(image_nchw, (0, 2, 3, 1)).astype(jnp.float32)
    x = conv(x, p["conv1_w"], p["conv1_b"])
    x = conv(x, p["conv2_w"], p["conv2_b"])
    feat = jnp.mean(x, axis=(1, 2))
    out1 = jnp.tanh(feat @ p["fc_w"] + p["fc_b"])
    out2 = jnp.tanh(env_state @ p["l1_w"] + p["l1_b"])
    h = jnp.tanh((out1 + out2) @ p["l2_w"] + p["l2_b"])
    m = jnp.tanh(h @ p["m_w"] + p["m_b"])
    lv = jax.nn.softmax(m @ p["lv_w"] + p["lv_b"], axis=-1)
    av = jax.nn.softmax(m @ p["av_w"] + p["av_b"], axis=-1)
    return jnp.concatenate([lv, av], axis=-1)


if __name__ == "__main__":
    key = jax.random.PRNGKey(0)
    k_img, k_state, k_params = jax.random.split(key, 3)

    B, C, H, W = 2, 4, 16, 16
    state_dim = 8

    image = jax.random.normal(k_img, (B, C, H, W), jnp.float32)   # NCHW, like PyTorch
    env_state = jax.random.normal(k_state, (B, state_dim), jnp.float32)

    params = init_agent_params(k_params, C, state_dim)
    kparams = prepare_params(params)

    out = jax.jit(agent_forward)(kparams, image, env_state)
    out = jax.block_until_ready(out)

    assert out.shape == (B, 10), out.shape
    # each softmax half sums to 1 (exact normalization in the kernel)
    sums = jnp.concatenate([jnp.sum(out[:, :5], -1), jnp.sum(out[:, 5:], -1)])
    assert bool(jnp.all(jnp.abs(sums - 1.0) < 1e-3)), sums
    # matches the pure-JAX f32 reference (bf16 MXU operands => loose tolerance)
    ref = _reference_forward(params, image, env_state)
    err = float(jnp.max(jnp.abs(out - ref)))
    assert err < 0.08, err
    print("KERNEL_OK")
</pallas_src>

<mosaic_0001>
module attributes {stable_mosaic.version = 11 : i64} {
  func.func @_agent_kernel(%arg0: i32, %arg1: memref<1x128x64xbf16, #tpu.memory_space<vmem>>, %arg2: memref<1x1x8xf32, #tpu.memory_space<vmem>>, %arg3: memref<128x1xf32, #tpu.memory_space<vmem>>, %arg4: memref<64x128xbf16, #tpu.memory_space<vmem>>, %arg5: memref<1x128xf32, #tpu.memory_space<vmem>>, %arg6: memref<9x128x256xbf16, #tpu.memory_space<vmem>>, %arg7: memref<1x256xf32, #tpu.memory_space<vmem>>, %arg8: memref<256x256xbf16, #tpu.memory_space<vmem>>, %arg9: memref<1x256xf32, #tpu.memory_space<vmem>>, %arg10: memref<8x256xbf16, #tpu.memory_space<vmem>>, %arg11: memref<1x256xf32, #tpu.memory_space<vmem>>, %arg12: memref<256x128xbf16, #tpu.memory_space<vmem>>, %arg13: memref<1x128xf32, #tpu.memory_space<vmem>>, %arg14: memref<128x128xbf16, #tpu.memory_space<vmem>>, %arg15: memref<1x128xf32, #tpu.memory_space<vmem>>, %arg16: memref<128x10xbf16, #tpu.memory_space<vmem>>, %arg17: memref<1x10xf32, #tpu.memory_space<vmem>>, %arg18: memref<1x1x10xf32, #tpu.memory_space<vmem>>, %arg19: memref<1x128x128xbf16, #tpu.memory_space<vmem>>) attributes {dimension_semantics = [#tpu.dimension_semantics<parallel>], iteration_bounds = array<i64: 2>, scalar_prefetch = 0 : i64, scratch_operands = 1 : i64, tpu.core_type = #tpu.core_type<tc>, window_params = [{transform_indices = @transform_0, window_bounds = array<i64: 1, 128, 64>}, {transform_indices = @transform_1, window_bounds = array<i64: 1, 1, 8>}, {pipeline_mode = #tpu.pipeline_mode<synchronous>, transform_indices = @transform_2, window_bounds = array<i64: 128, 1>}, {pipeline_mode = #tpu.pipeline_mode<synchronous>, transform_indices = @transform_3, window_bounds = array<i64: 64, 128>}, {pipeline_mode = #tpu.pipeline_mode<synchronous>, transform_indices = @transform_4, window_bounds = array<i64: 1, 128>}, {pipeline_mode = #tpu.pipeline_mode<synchronous>, transform_indices = @transform_5, window_bounds = array<i64: 9, 128, 256>}, {pipeline_mode = #tpu.pipeline_mode<synchronous>, transform_indices = @transform_6, window_bounds = array<i64: 1, 256>}, {pipeline_mode = #tpu.pipeline_mode<synchronous>, transform_indices = @transform_7, window_bounds = array<i64: 256, 256>}, {pipeline_mode = #tpu.pipeline_mode<synchronous>, transform_indices = @transform_8, window_bounds = array<i64: 1, 256>}, {pipeline_mode = #tpu.pipeline_mode<synchronous>, transform_indices = @transform_9, window_bounds = array<i64: 8, 256>}, {pipeline_mode = #tpu.pipeline_mode<synchronous>, transform_indices = @transform_10, window_bounds = array<i64: 1, 256>}, {pipeline_mode = #tpu.pipeline_mode<synchronous>, transform_indices = @transform_11, window_bounds = array<i64: 256, 128>}, {pipeline_mode = #tpu.pipeline_mode<synchronous>, transform_indices = @transform_12, window_bounds = array<i64: 1, 128>}, {pipeline_mode = #tpu.pipeline_mode<synchronous>, transform_indices = @transform_13, window_bounds = array<i64: 128, 128>}, {pipeline_mode = #tpu.pipeline_mode<synchronous>, transform_indices = @transform_14, window_bounds = array<i64: 1, 128>}, {pipeline_mode = #tpu.pipeline_mode<synchronous>, transform_indices = @transform_15, window_bounds = array<i64: 128, 10>}, {pipeline_mode = #tpu.pipeline_mode<synchronous>, transform_indices = @transform_16, window_bounds = array<i64: 1, 10>}, {transform_indices = @transform_17, window_bounds = array<i64: 1, 1, 10>}]} {
    %c0 = arith.constant 0 : index
    %c0_0 = arith.constant 0 : index
    %c0_1 = arith.constant 0 : index
    %0 = vector.load %arg1[%c0, %c0_0, %c0_1] : memref<1x128x64xbf16, #tpu.memory_space<vmem>>, vector<1x128x64xbf16>
    %1 = vector.shape_cast %0 : vector<1x128x64xbf16> to vector<128x64xbf16>
    %c0_2 = arith.constant 0 : index
    %c0_3 = arith.constant 0 : index
    %2 = vector.load %arg4[%c0_2, %c0_3] : memref<64x128xbf16, #tpu.memory_space<vmem>>, vector<64x128xbf16>
    %cst = arith.constant dense<0.000000e+00> : vector<128x128xf32>
    %3 = tpu.matmul %1, %2, %cst {dimension_numbers = #tpu.dot_dimension_numbers<[1], [0], [0], [1], [0, 0, 1, 1], [], []>} : vector<128x64xbf16>, vector<64x128xbf16>, vector<128x128xf32> -> vector<128x128xf32>
    %c0_4 = arith.constant 0 : index
    %c0_5 = arith.constant 0 : index
    %4 = vector.load %arg5[%c0_4, %c0_5] : memref<1x128xf32, #tpu.memory_space<vmem>>, vector<1x128xf32>
    %5 = vector.broadcast %4 : vector<1x128xf32> to vector<128x128xf32>
    %6 = arith.addf %3, %5 : vector<128x128xf32>
    %cst_6 = arith.constant 0.000000e+00 : f32
    %7 = vector.broadcast %cst_6 : f32 to vector<128x128xf32>
    %8 = arith.maximumf %6, %7 : vector<128x128xf32>
    %9 = vector.shape_cast %8 : vector<128x128xf32> to vector<1x128x128xf32>
    %c0_7 = arith.constant 0 : index
    %c0_8 = arith.constant 0 : index
    %10 = vector.load %arg3[%c0_7, %c0_8] : memref<128x1xf32, #tpu.memory_space<vmem>>, vector<128x1xf32>
    %11 = vector.shape_cast %10 : vector<128x1xf32> to vector<1x128x1xf32>
    %12 = vector.broadcast %11 : vector<1x128x1xf32> to vector<1x128x128xf32>
    %13 = arith.mulf %9, %12 : vector<1x128x128xf32>
    %14 = arith.truncf %13 : vector<1x128x128xf32> to vector<1x128x128xbf16>
    %c0_9 = arith.constant 0 : index
    %c0_10 = arith.constant 0 : index
    %c0_11 = arith.constant 0 : index
    %15 = vector.load %arg19[%c0_9, %c0_10, %c0_11] : memref<1x128x128xbf16, #tpu.memory_space<vmem>>, vector<1x128x128xbf16>
    tpu.vector_store %arg19[%c0_9, %c0_10, %c0_11], %14 {strides = array<i32>} : memref<1x128x128xbf16, #tpu.memory_space<vmem>>, vector<1x128x128xbf16>,
    %16 = tpu.iota {dimensions = array<i32: 1>} : vector<1x19xi32>
    %c5_i32 = arith.constant 5 : i32
    %c0_i32 = arith.constant 0 : i32
    %17 = arith.cmpi eq, %c5_i32, %c0_i32 : i32
    %c1_i32 = arith.constant 1 : i32
    %18 = arith.select %17, %c1_i32, %c5_i32 : i32
    %19 = vector.broadcast %18 : i32 to vector<1x19xi32>
    %20 = arith.remsi %16, %19 : vector<1x19xi32>
    %c0_i32_12 = arith.constant 0 : i32
    %21 = vector.broadcast %c0_i32_12 : i32 to vector<1x19xi32>
    %22 = arith.cmpi ne, %20, %21 : vector<1x19xi32>
    %c0_i32_13 = arith.constant 0 : i32
    %23 = vector.broadcast %c0_i32_13 : i32 to vector<1x19xi32>
    %24 = arith.cmpi slt, %20, %23 : vector<1x19xi32>
    %c0_i32_14 = arith.constant 0 : i32
    %25 = arith.cmpi slt, %18, %c0_i32_14 : i32
    %26 = vector.broadcast %25 : i1 to vector<1x19xi1>
    %27 = vector.broadcast %26 : vector<1x19xi1> to vector<1x19xi1>
    %28 = arith.xori %24, %27 : vector<1x19xi1>
    %29 = arith.andi %28, %22 : vector<1x19xi1>
    %30 = vector.broadcast %18 : i32 to vector<1x19xi32>
    %31 = arith.addi %20, %30 : vector<1x19xi32>
    %32 = arith.select %29, %31, %20 : vector<1x19xi1>, vector<1x19xi32>
    %c4_i32 = arith.constant 4 : i32
    %33 = vector.broadcast %c4_i32 : i32 to vector<1x19xi32>
    %34 = arith.cmpi slt, %32, %33 : vector<1x19xi32>
    %cst_15 = arith.constant 6.250000e-02 : f32
    %cst_16 = arith.constant 0.000000e+00 : f32
    %35 = vector.broadcast %cst_15 : f32 to vector<1x19xf32>
    %36 = vector.broadcast %cst_16 : f32 to vector<1x19xf32>
    %37 = arith.select %34, %35, %36 : vector<1x19xi1>, vector<1x19xf32>
    %cst_17 = arith.constant 0.000000e+00 : f32
    %38 = vector.broadcast %cst_17 : f32 to vector<19x256xf32>
    %c0_18 = arith.constant 0 : index
    %c0_19 = arith.constant 0 : index
    %c0_20 = arith.constant 0 : index
    %39 = vector.load %arg19[%c0_18, %c0_19, %c0_20] : memref<1x128x128xbf16, #tpu.memory_space<vmem>>, vector<1x19x128xbf16>
    %40 = vector.shape_cast %39 : vector<1x19x128xbf16> to vector<19x128xbf16>
    %c0_21 = arith.constant 0 : index
    %c0_22 = arith.constant 0 : index
    %c0_23 = arith.constant 0 : index
    %41 = vector.load %arg6[%c0_21, %c0_22, %c0_23] : memref<9x128x256xbf16, #tpu.memory_space<vmem>>, vector<1x128x256xbf16>
    %42 = vector.shape_cast %41 : vector<1x128x256xbf16> to vector<128x256xbf16>
    %cst_24 = arith.constant dense<0.000000e+00> : vector<19x256xf32>
    %43 = tpu.matmul %40, %42, %cst_24 {dimension_numbers = #tpu.dot_dimension_numbers<[1], [0], [0], [1], [0, 0, 1, 1], [], []>} : vector<19x128xbf16>, vector<128x256xbf16>, vector<19x256xf32> -> vector<19x256xf32>
    %44 = arith.addf %38, %43 : vector<19x256xf32>
    %c0_25 = arith.constant 0 : index
    %c32 = arith.constant 32 : index
    %c0_26 = arith.constant 0 : index
    %45 = vector.load %arg19[%c0_25, %c32, %c0_26] : memref<1x128x128xbf16, #tpu.memory_space<vmem>>, vector<1x19x128xbf16>
    %46 = vector.shape_cast %45 : vector<1x19x128xbf16> to vector<19x128xbf16>
    %c1 = arith.constant 1 : index
    %c0_27 = arith.constant 0 : index
    %c0_28 = arith.constant 0 : index
    %47 = vector.load %arg6[%c1, %c0_27, %c0_28] : memref<9x128x256xbf16, #tpu.memory_space<vmem>>, vector<1x128x256xbf16>
    %48 = vector.shape_cast %47 : vector<1x128x256xbf16> to vector<128x256xbf16>
    %cst_29 = arith.constant dense<0.000000e+00> : vector<19x256xf32>
    %49 = tpu.matmul %46, %48, %cst_29 {dimension_numbers = #tpu.dot_dimension_numbers<[1], [0], [0], [1], [0, 0, 1, 1], [], []>} : vector<19x128xbf16>, vector<128x256xbf16>, vector<19x256xf32> -> vector<19x256xf32>
    %50 = arith.addf %44, %49 : vector<19x256xf32>
    %c0_30 = arith.constant 0 : index
    %c1_31 = arith.constant 1 : index
    %c0_32 = arith.constant 0 : index
    %51 = vector.load %arg19[%c0_30, %c1_31, %c0_32] : memref<1x128x128xbf16, #tpu.memory_space<vmem>>, vector<1x19x128xbf16>
    %52 = vector.shape_cast %51 : vector<1x19x128xbf16> to vector<19x128xbf16>
    %c2 = arith.constant 2 : index
    %c0_33 = arith.constant 0 : index
    %c0_34 = arith.constant 0 : index
    %53 = vector.load %arg6[%c2, %c0_33, %c0_34] : memref<9x128x256xbf16, #tpu.memory_space<vmem>>, vector<1x128x256xbf16>
    %54 = vector.shape_cast %53 : vector<1x128x256xbf16> to vector<128x256xbf16>
    %cst_35 = arith.constant dense<0.000000e+00> : vector<19x256xf32>
    %55 = tpu.matmul %52, %54, %cst_35 {dimension_numbers = #tpu.dot_dimension_numbers<[1], [0], [0], [1], [0, 0, 1, 1], [], []>} : vector<19x128xbf16>, vector<128x256xbf16>, vector<19x256xf32> -> vector<19x256xf32>
    %56 = arith.addf %50, %55 : vector<19x256xf32>
    %c0_36 = arith.constant 0 : index
    %c64 = arith.constant 64 : index
    %c0_37 = arith.constant 0 : index
    %57 = vector.load %arg19[%c0_36, %c64, %c0_37] : memref<1x128x128xbf16, #tpu.memory_space<vmem>>, vector<1x19x128xbf16>
    %58 = vector.shape_cast %57 : vector<1x19x128xbf16> to vector<19x128xbf16>
    %c3 = arith.constant 3 : index
    %c0_38 = arith.constant 0 : index
    %c0_39 = arith.constant 0 : index
    %59 = vector.load %arg6[%c3, %c0_38, %c0_39] : memref<9x128x256xbf16, #tpu.memory_space<vmem>>, vector<1x128x256xbf16>
    %60 = vector.shape_cast %59 : vector<1x128x256xbf16> to vector<128x256xbf16>
    %cst_40 = arith.constant dense<0.000000e+00> : vector<19x256xf32>
    %61 = tpu.matmul %58, %60, %cst_40 {dimension_numbers = #tpu.dot_dimension_numbers<[1], [0], [0], [1], [0, 0, 1, 1], [], []>} : vector<19x128xbf16>, vector<128x256xbf16>, vector<19x256xf32> -> vector<19x256xf32>
    %62 = arith.addf %56, %61 : vector<19x256xf32>
    %c0_41 = arith.constant 0 : index
    %c96 = arith.constant 96 : index
    %c0_42 = arith.constant 0 : index
    %63 = vector.load %arg19[%c0_41, %c96, %c0_42] : memref<1x128x128xbf16, #tpu.memory_space<vmem>>, vector<1x19x128xbf16>
    %64 = vector.shape_cast %63 : vector<1x19x128xbf16> to vector<19x128xbf16>
    %c4 = arith.constant 4 : index
    %c0_43 = arith.constant 0 : index
    %c0_44 = arith.constant 0 : index
    %65 = vector.load %arg6[%c4, %c0_43, %c0_44] : memref<9x128x256xbf16, #tpu.memory_space<vmem>>, vector<1x128x256xbf16>
    %66 = vector.shape_cast %65 : vector<1x128x256xbf16> to vector<128x256xbf16>
    %cst_45 = arith.constant dense<0.000000e+00> : vector<19x256xf32>
    %67 = tpu.matmul %64, %66, %cst_45 {dimension_numbers = #tpu.dot_dimension_numbers<[1], [0], [0], [1], [0, 0, 1, 1], [], []>} : vector<19x128xbf16>, vector<128x256xbf16>, vector<19x256xf32> -> vector<19x256xf32>
    %68 = arith.addf %62, %67 : vector<19x256xf32>
    %c0_46 = arith.constant 0 : index
    %c65 = arith.constant 65 : index
    %c0_47 = arith.constant 0 : index
    %69 = vector.load %arg19[%c0_46, %c65, %c0_47] : memref<1x128x128xbf16, #tpu.memory_space<vmem>>, vector<1x19x128xbf16>
    %70 = vector.shape_cast %69 : vector<1x19x128xbf16> to vector<19x128xbf16>
    %c5 = arith.constant 5 : index
    %c0_48 = arith.constant 0 : index
    %c0_49 = arith.constant 0 : index
    %71 = vector.load %arg6[%c5, %c0_48, %c0_49] : memref<9x128x256xbf16, #tpu.memory_space<vmem>>, vector<1x128x256xbf16>
    %72 = vector.shape_cast %71 : vector<1x128x256xbf16> to vector<128x256xbf16>
    %cst_50 = arith.constant dense<0.000000e+00> : vector<19x256xf32>
    %73 = tpu.matmul %70, %72, %cst_50 {dimension_numbers = #tpu.dot_dimension_numbers<[1], [0], [0], [1], [0, 0, 1, 1], [], []>} : vector<19x128xbf16>, vector<128x256xbf16>, vector<19x256xf32> -> vector<19x256xf32>
    %74 = arith.addf %68, %73 : vector<19x256xf32>
    %c0_51 = arith.constant 0 : index
    %c5_52 = arith.constant 5 : index
    %c0_53 = arith.constant 0 : index
    %75 = vector.load %arg19[%c0_51, %c5_52, %c0_53] : memref<1x128x128xbf16, #tpu.memory_space<vmem>>, vector<1x19x128xbf16>
    %76 = vector.shape_cast %75 : vector<1x19x128xbf16> to vector<19x128xbf16>
    %c6 = arith.constant 6 : index
    %c0_54 = arith.constant 0 : index
    %c0_55 = arith.constant 0 : index
    %77 = vector.load %arg6[%c6, %c0_54, %c0_55] : memref<9x128x256xbf16, #tpu.memory_space<vmem>>, vector<1x128x256xbf16>
    %78 = vector.shape_cast %77 : vector<1x128x256xbf16> to vector<128x256xbf16>
    %cst_56 = arith.constant dense<0.000000e+00> : vector<19x256xf32>
    %79 = tpu.matmul %76, %78, %cst_56 {dimension_numbers = #tpu.dot_dimension_numbers<[1], [0], [0], [1], [0, 0, 1, 1], [], []>} : vector<19x128xbf16>, vector<128x256xbf16>, vector<19x256xf32> -> vector<19x256xf32>
    %80 = arith.addf %74, %79 : vector<19x256xf32>
    %c0_57 = arith.constant 0 : index
    %c37 = arith.constant 37 : index
    %c0_58 = arith.constant 0 : index
    %81 = vector.load %arg19[%c0_57, %c37, %c0_58] : memref<1x128x128xbf16, #tpu.memory_space<vmem>>, vector<1x19x128xbf16>
    %82 = vector.shape_cast %81 : vector<1x19x128xbf16> to vector<19x128xbf16>
    %c7 = arith.constant 7 : index
    %c0_59 = arith.constant 0 : index
    %c0_60 = arith.constant 0 : index
    %83 = vector.load %arg6[%c7, %c0_59, %c0_60] : memref<9x128x256xbf16, #tpu.memory_space<vmem>>, vector<1x128x256xbf16>
    %84 = vector.shape_cast %83 : vector<1x128x256xbf16> to vector<128x256xbf16>
    %cst_61 = arith.constant dense<0.000000e+00> : vector<19x256xf32>
    %85 = tpu.matmul %82, %84, %cst_61 {dimension_numbers = #tpu.dot_dimension_numbers<[1], [0], [0], [1], [0, 0, 1, 1], [], []>} : vector<19x128xbf16>, vector<128x256xbf16>, vector<19x256xf32> -> vector<19x256xf32>
    %86 = arith.addf %80, %85 : vector<19x256xf32>
    %c0_62 = arith.constant 0 : index
    %c6_63 = arith.constant 6 : index
    %c0_64 = arith.constant 0 : index
    %87 = vector.load %arg19[%c0_62, %c6_63, %c0_64] : memref<1x128x128xbf16, #tpu.memory_space<vmem>>, vector<1x19x128xbf16>
    %88 = vector.shape_cast %87 : vector<1x19x128xbf16> to vector<19x128xbf16>
    %c8 = arith.constant 8 : index
    %c0_65 = arith.constant 0 : index
    %c0_66 = arith.constant 0 : index
    %89 = vector.load %arg6[%c8, %c0_65, %c0_66] : memref<9x128x256xbf16, #tpu.memory_space<vmem>>, vector<1x128x256xbf16>
    %90 = vector.shape_cast %89 : vector<1x128x256xbf16> to vector<128x256xbf16>
    %cst_67 = arith.constant dense<0.000000e+00> : vector<19x256xf32>
    %91 = tpu.matmul %88, %90, %cst_67 {dimension_numbers = #tpu.dot_dimension_numbers<[1], [0], [0], [1], [0, 0, 1, 1], [], []>} : vector<19x128xbf16>, vector<128x256xbf16>, vector<19x256xf32> -> vector<19x256xf32>
    %92 = arith.addf %86, %91 : vector<19x256xf32>
    %c0_68 = arith.constant 0 : index
    %c0_69 = arith.constant 0 : index
    %93 = vector.load %arg7[%c0_68, %c0_69] : memref<1x256xf32, #tpu.memory_space<vmem>>, vector<1x256xf32>
    %94 = vector.broadcast %93 : vector<1x256xf32> to vector<19x256xf32>
    %95 = arith.addf %92, %94 : vector<19x256xf32>
    %cst_70 = arith.constant 0.000000e+00 : f32
    %96 = vector.broadcast %cst_70 : f32 to vector<19x256xf32>
    %97 = arith.maximumf %95, %96 : vector<19x256xf32>
    %cst_71 = arith.constant dense<0.000000e+00> : vector<1x256xf32>
    %98 = tpu.matmul %37, %97, %cst_71 {dimension_numbers = #tpu.dot_dimension_numbers<[1], [0], [0], [1], [0, 0, 1, 1], [], []>} : vector<1x19xf32>, vector<19x256xf32>, vector<1x256xf32> -> vector<1x256xf32>
    %c0_72 = arith.constant 0 : index
    %c0_73 = arith.constant 0 : index
    %c0_74 = arith.constant 0 : index
    %99 = vector.load %arg2[%c0_72, %c0_73, %c0_74] : memref<1x1x8xf32, #tpu.memory_space<vmem>>, vector<1x1x8xf32>
    %100 = vector.shape_cast %99 : vector<1x1x8xf32> to vector<1x8xf32>
    %101 = arith.truncf %98 : vector<1x256xf32> to vector<1x256xbf16>
    %c0_75 = arith.constant 0 : index
    %c0_76 = arith.constant 0 : index
    %102 = vector.load %arg8[%c0_75, %c0_76] : memref<256x256xbf16, #tpu.memory_space<vmem>>, vector<256x256xbf16>
    %cst_77 = arith.constant dense<0.000000e+00> : vector<1x256xf32>
    %103 = tpu.matmul %101, %102, %cst_77 {dimension_numbers = #tpu.dot_dimension_numbers<[1], [0], [0], [1], [0, 0, 1, 1], [], []>} : vector<1x256xbf16>, vector<256x256xbf16>, vector<1x256xf32> -> vector<1x256xf32>
    %c0_78 = arith.constant 0 : index
    %c0_79 = arith.constant 0 : index
    %104 = vector.load %arg9[%c0_78, %c0_79] : memref<1x256xf32, #tpu.memory_space<vmem>>, vector<1x256xf32>
    %105 = arith.addf %103, %104 : vector<1x256xf32>
    %106 = math.tanh %105 : vector<1x256xf32>
    %107 = arith.truncf %100 : vector<1x8xf32> to vector<1x8xbf16>
    %c0_80 = arith.constant 0 : index
    %c0_81 = arith.constant 0 : index
    %108 = vector.load %arg10[%c0_80, %c0_81] : memref<8x256xbf16, #tpu.memory_space<vmem>>, vector<8x256xbf16>
    %cst_82 = arith.constant dense<0.000000e+00> : vector<1x256xf32>
    %109 = tpu.matmul %107, %108, %cst_82 {dimension_numbers = #tpu.dot_dimension_numbers<[1], [0], [0], [1], [0, 0, 1, 1], [], []>} : vector<1x8xbf16>, vector<8x256xbf16>, vector<1x256xf32> -> vector<1x256xf32>
    %c0_83 = arith.constant 0 : index
    %c0_84 = arith.constant 0 : index
    %110 = vector.load %arg11[%c0_83, %c0_84] : memref<1x256xf32, #tpu.memory_space<vmem>>, vector<1x256xf32>
    %111 = arith.addf %109, %110 : vector<1x256xf32>
    %112 = math.tanh %111 : vector<1x256xf32>
    %113 = arith.addf %106, %112 : vector<1x256xf32>
    %114 = arith.truncf %113 : vector<1x256xf32> to vector<1x256xbf16>
    %c0_85 = arith.constant 0 : index
    %c0_86 = arith.constant 0 : index
    %115 = vector.load %arg12[%c0_85, %c0_86] : memref<256x128xbf16, #tpu.memory_space<vmem>>, vector<256x128xbf16>
    %cst_87 = arith.constant dense<0.000000e+00> : vector<1x128xf32>
    %116 = tpu.matmul %114, %115, %cst_87 {dimension_numbers = #tpu.dot_dimension_numbers<[1], [0], [0], [1], [0, 0, 1, 1], [], []>} : vector<1x256xbf16>, vector<256x128xbf16>, vector<1x128xf32> -> vector<1x128xf32>
    %c0_88 = arith.constant 0 : index
    %c0_89 = arith.constant 0 : index
    %117 = vector.load %arg13[%c0_88, %c0_89] : memref<1x128xf32, #tpu.memory_space<vmem>>, vector<1x128xf32>
    %118 = arith.addf %116, %117 : vector<1x128xf32>
    %119 = math.tanh %118 : vector<1x128xf32>
    %120 = arith.truncf %119 : vector<1x128xf32> to vector<1x128xbf16>
    %c0_90 = arith.constant 0 : index
    %c0_91 = arith.constant 0 : index
    %121 = vector.load %arg14[%c0_90, %c0_91] : memref<128x128xbf16, #tpu.memory_space<vmem>>, vector<128x128xbf16>
    %cst_92 = arith.constant dense<0.000000e+00> : vector<1x128xf32>
    %122 = tpu.matmul %120, %121, %cst_92 {dimension_numbers = #tpu.dot_dimension_numbers<[1], [0], [0], [1], [0, 0, 1, 1], [], []>} : vector<1x128xbf16>, vector<128x128xbf16>, vector<1x128xf32> -> vector<1x128xf32>
    %c0_93 = arith.constant 0 : index
    %c0_94 = arith.constant 0 : index
    %123 = vector.load %arg15[%c0_93, %c0_94] : memref<1x128xf32, #tpu.memory_space<vmem>>, vector<1x128xf32>
    %124 = arith.addf %122, %123 : vector<1x128xf32>
    %125 = math.tanh %124 : vector<1x128xf32>
    %126 = arith.truncf %125 : vector<1x128xf32> to vector<1x128xbf16>
    %c0_95 = arith.constant 0 : index
    %c0_96 = arith.constant 0 : index
    %127 = vector.load %arg16[%c0_95, %c0_96] : memref<128x10xbf16, #tpu.memory_space<vmem>>, vector<128x10xbf16>
    %cst_97 = arith.constant dense<0.000000e+00> : vector<1x10xf32>
    %128 = tpu.matmul %126, %127, %cst_97 {dimension_numbers = #tpu.dot_dimension_numbers<[1], [0], [0], [1], [0, 0, 1, 1], [], []>} : vector<1x128xbf16>, vector<128x10xbf16>, vector<1x10xf32> -> vector<1x10xf32>
    %c0_98 = arith.constant 0 : index
    %c0_99 = arith.constant 0 : index
    %129 = vector.load %arg17[%c0_98, %c0_99] : memref<1x10xf32, #tpu.memory_space<vmem>>, vector<1x10xf32>
    %130 = arith.addf %128, %129 : vector<1x10xf32>
    %131 = tpu.iota {dimensions = array<i32: 1>} : vector<1x10xi32>
    %c5_i32_100 = arith.constant 5 : i32
    %132 = vector.broadcast %c5_i32_100 : i32 to vector<1x10xi32>
    %133 = arith.cmpi slt, %131, %132 : vector<1x10xi32>
    %cst_101 = arith.constant -1.000000e+30 : f32
    %134 = vector.broadcast %cst_101 : f32 to vector<1x10xf32>
    %135 = arith.select %133, %130, %134 : vector<1x10xi1>, vector<1x10xf32>
    %cst_102 = arith.constant dense<0xFF800000> : vector<1xf32>
    %136 = vector.multi_reduction <maximumf>, %135, %cst_102 [1] : vector<1x10xf32> to vector<1xf32>
    %137 = vector.shape_cast %136 : vector<1xf32> to vector<1x1xf32>
    %cst_103 = arith.constant -1.000000e+30 : f32
    %138 = vector.broadcast %cst_103 : f32 to vector<1x10xf32>
    %139 = arith.select %133, %138, %130 : vector<1x10xi1>, vector<1x10xf32>
    %cst_104 = arith.constant dense<0xFF800000> : vector<1xf32>
    %140 = vector.multi_reduction <maximumf>, %139, %cst_104 [1] : vector<1x10xf32> to vector<1xf32>
    %141 = vector.shape_cast %140 : vector<1xf32> to vector<1x1xf32>
    %142 = vector.shape_cast %137 : vector<1x1xf32> to vector<1x1xf32>
    %143 = vector.broadcast %142 : vector<1x1xf32> to vector<1x10xf32>
    %144 = vector.shape_cast %141 : vector<1x1xf32> to vector<1x1xf32>
    %145 = vector.broadcast %144 : vector<1x1xf32> to vector<1x10xf32>
    %146 = arith.select %133, %143, %145 : vector<1x10xi1>, vector<1x10xf32>
    %147 = arith.subf %130, %146 : vector<1x10xf32>
    %148 = math.exp %147 : vector<1x10xf32>
    %cst_105 = arith.constant 0.000000e+00 : f32
    %149 = vector.broadcast %cst_105 : f32 to vector<1x10xf32>
    %150 = arith.select %133, %148, %149 : vector<1x10xi1>, vector<1x10xf32>
    %cst_106 = arith.constant dense<0.000000e+00> : vector<1xf32>
    %151 = vector.multi_reduction <add>, %150, %cst_106 [1] : vector<1x10xf32> to vector<1xf32>
    %152 = vector.shape_cast %151 : vector<1xf32> to vector<1x1xf32>
    %cst_107 = arith.constant 0.000000e+00 : f32
    %153 = vector.broadcast %cst_107 : f32 to vector<1x10xf32>
    %154 = arith.select %133, %153, %148 : vector<1x10xi1>, vector<1x10xf32>
    %cst_108 = arith.constant dense<0.000000e+00> : vector<1xf32>
    %155 = vector.multi_reduction <add>, %154, %cst_108 [1] : vector<1x10xf32> to vector<1xf32>
    %156 = vector.shape_cast %155 : vector<1xf32> to vector<1x1xf32>
    %157 = vector.shape_cast %152 : vector<1x1xf32> to vector<1x1xf32>
    %158 = vector.broadcast %157 : vector<1x1xf32> to vector<1x10xf32>
    %159 = vector.shape_cast %156 : vector<1x1xf32> to vector<1x1xf32>
    %160 = vector.broadcast %159 : vector<1x1xf32> to vector<1x10xf32>
    %161 = arith.select %133, %158, %160 : vector<1x10xi1>, vector<1x10xf32>
    %162 = arith.divf %148, %161 : vector<1x10xf32>
    %163 = vector.shape_cast %162 : vector<1x10xf32> to vector<1x1x10xf32>
    %c0_109 = arith.constant 0 : index
    %c0_110 = arith.constant 0 : index
    %c0_111 = arith.constant 0 : index
    %164 = vector.load %arg18[%c0_109, %c0_110, %c0_111] : memref<1x1x10xf32, #tpu.memory_space<vmem>>, vector<1x1x10xf32>
    tpu.vector_store %arg18[%c0_109, %c0_110, %c0_111], %163 {strides = array<i32>} : memref<1x1x10xf32, #tpu.memory_space<vmem>>, vector<1x1x10xf32>,
    return
  }
  func.func @transform_0(%arg0: i32) -> (i32, i32, i32) {
    %c0_i32 = arith.constant 0 : i32
    %c0_i32_0 = arith.constant 0 : i32
    %c0_i32_1 = arith.constant 0 : i32
    return %arg0, %c0_i32, %c0_i32_0 : i32, i32, i32
  }
  func.func @transform_1(%arg0: i32) -> (i32, i32, i32) {
    %c0_i32 = arith.constant 0 : i32
    %c0_i32_0 = arith.constant 0 : i32
    %c0_i32_1 = arith.constant 0 : i32
    return %arg0, %c0_i32, %c0_i32_0 : i32, i32, i32
  }
  func.func @transform_2(%arg0: i32) -> (i32, i32) {
    %c0_i32 = arith.constant 0 : i32
    %c0_i32_0 = arith.constant 0 : i32
    %c0_i32_1 = arith.constant 0 : i32
    return %c0_i32, %c0_i32_0 : i32, i32
  }
  func.func @transform_3(%arg0: i32) -> (i32, i32) {
    %c0_i32 = arith.constant 0 : i32
    %c0_i32_0 = arith.constant 0 : i32
    %c0_i32_1 = arith.constant 0 : i32
    return %c0_i32, %c0_i32_0 : i32, i32
  }
  func.func @transform_4(%arg0: i32) -> (i32, i32) {
    %c0_i32 = arith.constant 0 : i32
    %c0_i32_0 = arith.constant 0 : i32
    %c0_i32_1 = arith.constant 0 : i32
    return %c0_i32, %c0_i32_0 : i32, i32
  }
  func.func @transform_5(%arg0: i32) -> (i32, i32, i32) {
    %c0_i32 = arith.constant 0 : i32
    %c0_i32_0 = arith.constant 0 : i32
    %c0_i32_1 = arith.constant 0 : i32
    %c0_i32_2 = arith.constant 0 : i32
    return %c0_i32, %c0_i32_0, %c0_i32_1 : i32, i32, i32
  }
  func.func @transform_6(%arg0: i32) -> (i32, i32) {
    %c0_i32 = arith.constant 0 : i32
    %c0_i32_0 = arith.constant 0 : i32
    %c0_i32_1 = arith.constant 0 : i32
    return %c0_i32, %c0_i32_0 : i32, i32
  }
  func.func @transform_7(%arg0: i32) -> (i32, i32) {
    %c0_i32 = arith.constant 0 : i32
    %c0_i32_0 = arith.constant 0 : i32
    %c0_i32_1 = arith.constant 0 : i32
    return %c0_i32, %c0_i32_0 : i32, i32
  }
  func.func @transform_8(%arg0: i32) -> (i32, i32) {
    %c0_i32 = arith.constant 0 : i32
    %c0_i32_0 = arith.constant 0 : i32
    %c0_i32_1 = arith.constant 0 : i32
    return %c0_i32, %c0_i32_0 : i32, i32
  }
  func.func @transform_9(%arg0: i32) -> (i32, i32) {
    %c0_i32 = arith.constant 0 : i32
    %c0_i32_0 = arith.constant 0 : i32
    %c0_i32_1 = arith.constant 0 : i32
    return %c0_i32, %c0_i32_0 : i32, i32
  }
  func.func @transform_10(%arg0: i32) -> (i32, i32) {
    %c0_i32 = arith.constant 0 : i32
    %c0_i32_0 = arith.constant 0 : i32
    %c0_i32_1 = arith.constant 0 : i32
    return %c0_i32, %c0_i32_0 : i32, i32
  }
  func.func @transform_11(%arg0: i32) -> (i32, i32) {
    %c0_i32 = arith.constant 0 : i32
    %c0_i32_0 = arith.constant 0 : i32
    %c0_i32_1 = arith.constant 0 : i32
    return %c0_i32, %c0_i32_0 : i32, i32
  }
  func.func @transform_12(%arg0: i32) -> (i32, i32) {
    %c0_i32 = arith.constant 0 : i32
    %c0_i32_0 = arith.constant 0 : i32
    %c0_i32_1 = arith.constant 0 : i32
    return %c0_i32, %c0_i32_0 : i32, i32
  }
  func.func @transform_13(%arg0: i32) -> (i32, i32) {
    %c0_i32 = arith.constant 0 : i32
    %c0_i32_0 = arith.constant 0 : i32
    %c0_i32_1 = arith.constant 0 : i32
    return %c0_i32, %c0_i32_0 : i32, i32
  }
  func.func @transform_14(%arg0: i32) -> (i32, i32) {
    %c0_i32 = arith.constant 0 : i32
    %c0_i32_0 = arith.constant 0 : i32
    %c0_i32_1 = arith.constant 0 : i32
    return %c0_i32, %c0_i32_0 : i32, i32
  }
  func.func @transform_15(%arg0: i32) -> (i32, i32) {
    %c0_i32 = arith.constant 0 : i32
    %c0_i32_0 = arith.constant 0 : i32
    %c0_i32_1 = arith.constant 0 : i32
    return %c0_i32, %c0_i32_0 : i32, i32
  }
  func.func @transform_16(%arg0: i32) -> (i32, i32) {
    %c0_i32 = arith.constant 0 : i32
    %c0_i32_0 = arith.constant 0 : i32
    %c0_i32_1 = arith.constant 0 : i32
    return %c0_i32, %c0_i32_0 : i32, i32
  }
  func.func @transform_17(%arg0: i32) -> (i32, i32, i32) {
    %c0_i32 = arith.constant 0 : i32
    %c0_i32_0 = arith.constant 0 : i32
    %c0_i32_1 = arith.constant 0 : i32
    return %arg0, %c0_i32, %c0_i32_0 : i32, i32, i32
  }
}

</mosaic_0001>

<bundles_post_ra>
// kernel: agent_forward.1
= control target key start
LH: loop header
LB: loop body
LE: loop exit
PB: predicated region body
PF: predicated region fallthrough
CT: control target
= control target key end

     0   :  { %s6240_s0 = inlined_call_operand.vmem [shape: bf16[2,128,64], index: 0, kind: input, shape index: {}]   ;;  %s6241_s1 = inlined_call_operand.vmem [shape: f32[2,1,8], index: 1, kind: input, shape index: {}]   ;;  %s6242_s2 = inlined_call_operand.vmem [shape: f32[128,1], index: 2, kind: input, shape index: {}]   ;;  %s6243_s3 = inlined_call_operand.vmem [shape: bf16[64,128], index: 3, kind: input, shape index: {}]   ;;  %s6244_s4 = inlined_call_operand.vmem [shape: f32[1,128], index: 4, kind: input, shape index: {}]   ;;  %s6245_s5 = inlined_call_operand.vmem [shape: bf16[9,128,256], index: 5, kind: input, shape index: {}]   ;;  %s6246_s6 = inlined_call_operand.vmem [shape: f32[1,256], index: 6, kind: input, shape index: {}]   ;;  %s6247_s7 = inlined_call_operand.vmem [shape: bf16[256,256], index: 7, kind: input, shape index: {}]   ;;  %s6248_s8 = inlined_call_operand.vmem [shape: f32[1,256], index: 8, kind: input, shape index: {}]   ;;  %s6249_s9 = inlined_call_operand.vmem [shape: bf16[8,256], index: 9, kind: input, shape index: {}]   ;;  %s6250_s10 = inlined_call_operand.vmem [shape: f32[1,256], index: 10, kind: input, shape index: {}]   ;;  %s6251_s11 = inlined_call_operand.vmem [shape: bf16[256,128], index: 11, kind: input, shape index: {}]   ;;  %s6252_s12 = inlined_call_operand.vmem [shape: f32[1,128], index: 12, kind: input, shape index: {}]   ;;  %s6253_s13 = inlined_call_operand.vmem [shape: bf16[128,128], index: 13, kind: input, shape index: {}]   ;;  %s6254_s14 = inlined_call_operand.vmem [shape: f32[1,128], index: 14, kind: input, shape index: {}]   ;;  %s6255_s15 = inlined_call_operand.vmem [shape: bf16[128,10], index: 15, kind: input, shape index: {}]   ;;  %s6256_s16 = inlined_call_operand.vmem [shape: f32[1,10], index: 16, kind: input, shape index: {}]   ;;  %s6257_s17 = inlined_call_operand.hbm [shape: f32[2,1,10], index: 17, kind: output, shape index: {}]  }
   0x1   :  { %6267 = sst [smem:[#allocation13_spill]] %s6240_s0 }
   0x2   :  { %6268 = sst [smem:[#allocation14_spill]] %s6241_s1 }
   0x3   :  { %6269 = sst [smem:[#allocation15_spill]] %s6242_s2 }
   0x4   :  { %6270 = sst [smem:[#allocation16_spill]] %s6257_s17 }
   0x5   :  { %22 = vsyncpa [#allocation4], 0 }
   0x6   :  { %24 = vsyncpa [#allocation4 + $0x1], 0  ;;  %s4686_s24 = smov 0   ;;  %s4688_s25 = smov 0  }
   0x7   :  { %s4690_s26 = smov 0   ;;  %s4692_s27 = smov 0  }
   0x8 LB: > { %6271 = sst [smem:[#allocation6_spill]] %s4580_s24  ;;  %s4707_s28 = sadd.s32 4294967295, %s4592_s27   ;;  %s4592_s27 = sphi %s4692_s27, %s6290_s27   ;;  %s4588_s26 = sphi %s4690_s26, %s6292_s26   ;;  %s4584_s25 = sphi %s4688_s25, %s6294_s25   ;;  %s4580_s24 = sphi %s4686_s24, %s6293_s24  }
   0x9   : > { %6272 = sst [smem:[#allocation7_spill]] %s4588_s26  ;;  %s3136_s29 = sadd.s32 4294967294, %s4592_s27  }
   0xa   : > { %6273 = sst [smem:[#allocation8_spill]] %s4592_s27  ;;  %s4711_s0 = sadd.s32 1, %s4592_s27  }
   0xb   : > { %6274 = sst [smem:[#allocation9_spill]] %s4711_s0  ;;  %s404_s30 = sadd.s32 1, %s4588_s26 }
   0xc   : > { %s401_s18 = ssub.s32 %s4592_s27, %s4711_s0  ;;  %p414_p0 = scmp.ne.s32.totalorder %s4588_s26, %s4584_s25 }
   0xd   : > { %p402_p1 = scmp.eq.s32.totalorder %s401_s18, 0  ;;  %p415_p2 = scmp.eq.s32.totalorder %s4707_s28, 1 }
   0xe   : > { %p420_p3 = scmp.ne.s32.totalorder %s4584_s25, %s4580_s24  ;;  %p421_p4 = scmp.eq.s32.totalorder %s3136_s29, 1 }
   0xf   : > { %s4722_s19 = scalar_select %p402_p1, %s4588_s26, %s404_s30  }
  0x10   : > { %p4724_p5 = por %p415_p2, %p414_p0  ;;  %p4728_p6 = por %p421_p4, %p420_p3 }
  0x11   : > { %6275 = sst [smem:[#allocation10_spill]] %s4722_s19  ;;  %p3139_p7 = scmp.ge.s32.totalorder %s4592_s27, 1 }
  0x12   : > { %s6276_s1 = scalar_select %p4724_p5, 1, 0 }
  0x13   : > { %s6278_s20 = scalar_select %p4728_p6, 1, 0 }
  0x14   : > { %6277 = sst [smem:[#allocation11_spill]] %s6276_s1  ;;  %p498_p8 = scmp.lt.s32.totalorder %s4592_s27, 3 }
  0x15   : > { %6279 = sst [smem:[#allocation12_spill]] %s6278_s20 }
  0x16   : > { %p499_p9 = pnand %p3139_p7, %p498_p8 }
  0x17   : > { %p552_p10 = scmp.lt.s32.totalorder (!%p499_p9), %s4707_s28, 1  ;;  %s6280_s2 = sld [smem:[#allocation15_spill]] (!%p499_p9) }
  0x18   : > { %502 = sbr.rel (%p499_p9) target bundleno = 1511 (0x5e7), region = 88  ;;  %s6281_s1 = sld [smem:[#allocation13_spill]] (!%p499_p9) }
  0x19   : > { %s6284_s23 = sld [smem:[#allocation14_spill]] (!%p499_p9) }
  0x1d   : > { %v4194_v0 = vld [vmem:[%s6243_s3 + $0x18] sm:$0xff]  ;;  %v4594_v1 = vmov 0   ;;  %v747_v2 = vld [vmem:[%s6280_s2 + $0x20] sm:$0xff]  ;;  %v749_v3 = vld [vmem:[%s6280_s2 + $0x30] sm:$0xff]  ;;  %s4750_s22 = scalar_select %p552_p10, %s4707_s28, 1  ;;  %vm653_vm0 = vcmask 523264  }
  0x1e   : > { %4510 = vset.pattern.permute.xlu0 %v4594_v1  ;;  %4511 = vset.pattern.permute.xlu1 %v4594_v1  ;;  %v4193_v4 = vld [vmem:[%s6243_s3 + $0x10] sm:$0xff]  ;;  %v4192_v5 = vld [vmem:[%s6243_s3 + $0x8] sm:$0xff]  ;;  %v750_v7 = vld [vmem:[%s6280_s2 + $0x38] sm:$0xff]  ;;  %vm1858_vm1 = vsmask.f32 5376  ;;  %vm2197_vm3 = vcmask 1044480  }
  0x1f   : > { %682 = vmatpush.bf16.msra.mxu0 %v4194_v0  ;;  %781 = vperm.xlu0 %4510, %v747_v2   ;;  %s4182_s26 = sshll.u32 %s4750_s22, 6  ;;  %v748_v6 = vld [vmem:[%s6280_s2 + $0x28] sm:$0xff]  ;;  %v4191_v8 = vld [vmem:[%s6243_s3] sm:$0xff]  ;;  %v745_v15 = vld [vmem:[%s6280_s2 + $0x10] sm:$0xff]  ;;  %vm1233_vm2 = vsmask.f32 7424  ;;  %s559_s0 = scalar_lea.vmem %s6284_s23, %s4750_s22 }
  0x20   : > { %791 = vperm.xlu1 %4511, %v749_v3   ;;  %4512 = vset.pattern.permute.xlu2 %v4594_v1  ;;  %s4769_s17 = scalar_lea.vmem %s6281_s1, %s4182_s26  ;;  %v743_v10 = vld [vmem:[%s6280_s2] sm:$0xff]  ;;  %v744_v11 = vld [vmem:[%s6280_s2 + $0x8] sm:$0xff]  ;;  %v753_v16 = vld [vmem:[%s6280_s2 + $0x50] sm:$0xff]  ;;  %vm2347_vm9 = vcmask 1042432   ;;  %vm2343_vm11 = vcmask 154624   ;;  %vm2666_vm12 = vcmask 1043456  }
  0x21   : > { %v4183_v9 = vld [vmem:[%s4769_s17] sm:$0xff]  ;;  %v752_v12 = vld [vmem:[%s6280_s2 + $0x48] sm:$0xff]  ;;  %771 = vperm.xlu2 %4512, %v745_v15   ;;  %v758_v17 = vld [vmem:[%s6280_s2 + $0x78] sm:$0xff]  ;;  %vm2662_vm13 = vcmask 64512   ;;  %vm3022_vm15 = vcmask 73728   ;;  %s550_s26 = sand.u32 1, %s4584_s25  }
  0x22   : > { %v4184_v13 = vld [vmem:[%s4769_s17 + $0x8] sm:$0xff]  ;;  %v755_v14 = vld [vmem:[%s6280_s2 + $0x60] sm:$0xff]  ;;  %v746_v18 = vld [vmem:[%s6280_s2 + $0x18] sm:$0xff]  ;;  %s6285_s1 = sld [smem:[#allocation16_spill]]  ;;  %s551_s19 = scalar_lea.vmem [#allocation3], %s550_s26 }
  0x23   : > { %683 = vmatpush.bf16.msra.mxu0 %v4193_v4  ;;  %v756_v19 = vld [vmem:[%s6280_s2 + $0x68] sm:$0xff]  ;;  %v4185_v20 = vld [vmem:[%s4769_s17 + $0x10] sm:$0xff]  ;;  %v4186_v21 = vld [vmem:[%s4769_s17 + $0x18] sm:$0xff]  ;;  %s3070_s21 = sshll.u32 %s551_s19, 4  ;;  %s3071_s21 = int_to_ptr.vmem [resolvable:$true] %s3070_s21 }
  0x24   : > { %v751_v22 = vld [vmem:[%s6280_s2 + $0x40] sm:$0xff]  ;;  %v754_v23 = vld [vmem:[%s6280_s2 + $0x58] sm:$0xff]  ;;  %v757_v25 = vld [vmem:[%s6280_s2 + $0x70] sm:$0xff] }
  0x25   : > { %v4187_v24 = vld [vmem:[%s4769_s17 + $0x20] sm:$0xff]  ;;  %v4188_v26 = vld [vmem:[%s4769_s17 + $0x28] sm:$0xff]  ;;  %v3336_v27 = vld [vmem:[%s6245_s5 + $0x70] sm:$0xf] }
  0x26   : > { %v4210_v28 = vld [vmem:[%s6245_s5 + $0x74] sm:$0xf0]  ;;  %v3328_v30 = vld [vmem:[%s6245_s5 + $0x60] sm:$0xf]  ;;  %v4208_v31 = vld [vmem:[%s6245_s5 + $0x64] sm:$0xf0] }
  0x27   : > { %684 = vmatpush.bf16.msra.mxu0 %v4192_v5  ;;  %786 = vperm.xlu0 %4510, %v748_v6   ;;  %v3337_v29 = vor.u32 %v4210_v28, %v3336_v27  ;;  %v3329_v32 = vor.u32 %v4208_v31, %v3328_v30  ;;  %v3320_v33 = vld [vmem:[%s6245_s5 + $0x50] sm:$0xf]  ;;  %v4206_v34 = vld [vmem:[%s6245_s5 + $0x54] sm:$0xf0]  ;;  %v3312_v36 = vld [vmem:[%s6245_s5 + $0x40] sm:$0xf] }
  0x28   : > { %796 = vperm.xlu1 %4511, %v750_v7   ;;  %v3321_v35 = vor.u32 %v4206_v34, %v3320_v33  ;;  %v4204_v37 = vld [vmem:[%s6245_s5 + $0x44] sm:$0xf0]  ;;  %v4189_v39 = vld [vmem:[%s4769_s17 + $0x30] sm:$0xff]  ;;  %v4202_v41 = vld [vmem:[%s6245_s5 + $0x34] sm:$0xf0]  ;;  %s3068_s20 = scalar_lea.hbm %s6285_s1, %s4707_s28  ;;  %s4550_s24 = scalar_lea.hbm %s6285_s1, 2 }
  0x29   : > { %776 = vperm.xlu2 %4512, %v746_v18   ;;  %1180 = vmatpush.bf16.msra.mxu3 %v3337_v29  ;;  %v3313_v38 = vor.u32 %v4204_v37, %v3312_v36  ;;  %v3304_v40 = vld [vmem:[%s6245_s5 + $0x30] sm:$0xf]  ;;  %v3296_v43 = vld [vmem:[%s6245_s5 + $0x20] sm:$0xf]  ;;  %v4200_v44 = vld [vmem:[%s6245_s5 + $0x24] sm:$0xf0] }
  0x2a   : > { %v3305_v42 = vor.u32 %v4202_v41, %v3304_v40  ;;  %v3297_v45 = vor.u32 %v4200_v44, %v3296_v43  ;;  %v3288_v46 = vld [vmem:[%s6245_s5 + $0x10] sm:$0xf]  ;;  %v4198_v47 = vld [vmem:[%s6245_s5 + $0x14] sm:$0xf0]  ;;  %v3280_v49 = vld [vmem:[%s6245_s5] sm:$0xf] }
  0x2b   : > { %685 = vmatpush.bf16.msra.mxu0 %v4191_v8  ;;  %v3289_v48 = vor.u32 %v4198_v47, %v3288_v46  ;;  %v4196_v50 = vld [vmem:[%s6245_s5 + $0x4] sm:$0xf0]  ;;  %v4190_v52 = vld [vmem:[%s4769_s17 + $0x38] sm:$0xff]  ;;  %v3272_v53 = vld [vmem:[%s6245_s5 + $0xf0] sm:$0xf]  ;;  %s3072_s23 = sshll.u32 %s3068_s20, 4  ;;  %s3073_s23 = int_to_ptr.hbm [resolvable:$true] %s3072_s23 }
  0x2c   : > { %v3281_v51 = vor.u32 %v4196_v50, %v3280_v49  ;;  %v4226_v54 = vld [vmem:[%s6245_s5 + $0xf4] sm:$0xf0]  ;;  %v4225_v55 = vld [vmem:[%s6245_s5 + $0xf4] sm:$0xf]  ;;  %v3274_v57 = vld [vmem:[%s6245_s5 + $0xf8] sm:$0xf0] }
  0x2d   : > { %1181 = vmatpush.bf16.msra.mxu3 %v3329_v32  ;;  %v3273_v56 = vor.u32 %v4226_v54, %v3272_v53  ;;  %v3277_v58 = vor.u32 %v4225_v55, %v3274_v57  ;;  %v3744_v59 = vld [vmem:[%s6245_s5 + $0x370] sm:$0xf]  ;;  %v4308_v60 = vld [vmem:[%s6245_s5 + $0x374] sm:$0xf0]  ;;  %v3264_v62 = vld [vmem:[%s6245_s5 + $0xe0] sm:$0xf] }
  0x2e   : > { %3190 = vmatmul.msk.bf16.vlgmr.msra.gmra.mxu0 %vm653_vm0, %v4183_v9  ;;  %v3745_v61 = vor.u32 %v4308_v60, %v3744_v59  ;;  %v4224_v63 = vld [vmem:[%s6245_s5 + $0xe4] sm:$0xf0]  ;;  %v4223_v0 = vld [vmem:[%s6245_s5 + $0xe4] sm:$0xf]  ;;  %v3266_v3 = vld [vmem:[%s6245_s5 + $0xe8] sm:$0xf0] }
  0x2f   : > { %761 = vperm.xlu0 %4510, %v743_v10   ;;  %1054 = vmatpush.bf16.msra.mxu1 %v3273_v56  ;;  %v3265_v2 = vor.u32 %v4224_v63, %v3264_v62  ;;  %v3269_v5 = vor.u32 %v4223_v0, %v3266_v3  ;;  %v3736_v7 = vld [vmem:[%s6245_s5 + $0x360] sm:$0xf]  ;;  %v4306_v8 = vld [vmem:[%s6245_s5 + $0x364] sm:$0xf0]  ;;  %v3256_v10 = vld [vmem:[%s6245_s5 + $0xd0] sm:$0xf] }
  0x30   : > { %766 = vperm.xlu1 %4511, %v744_v11   ;;  %1072 = vmatpush.bf16.msra.mxu2 %v3277_v58  ;;  %v3737_v9 = vor.u32 %v4306_v8, %v3736_v7  ;;  %v4222_v11 = vld [vmem:[%s6245_s5 + $0xd4] sm:$0xf0]  ;;  %v3720_v28 = vld [vmem:[%s6245_s5 + $0x340] sm:$0xf]  ;;  %v4302_v29 = vld [vmem:[%s6245_s5 + $0x344] sm:$0xf0] }
  0x31   : > { %801 = vperm.xlu2 %4512, %v751_v22   ;;  %1182 = vmatpush.bf16.msra.mxu3 %v3321_v35  ;;  %v3721_v31 = vor.u32 %v4302_v29, %v3720_v28  ;;  %v4239_v32 = vld [vmem:[%s6245_s5 + $0x164] sm:$0xf]  ;;  %v3410_v33 = vld [vmem:[%s6245_s5 + $0x168] sm:$0xf0]  ;;  %v3240_v34 = vld [vmem:[%s6245_s5 + $0xb0] sm:$0xf] }
  0x32   : > { %1958 = vmatpush.bf16.msrb.mxu0 %v3745_v61  ;;  %v3413_v37 = vor.u32 %v4239_v32, %v3410_v33  ;;  %v3242_v40 = vld [vmem:[%s6245_s5 + $0xb8] sm:$0xf0]  ;;  %v4978_v41 = vld [vmem:[%s6244_s4] ss:$0 sm:$0xff]  ;;  %v3712_v44 = vld [vmem:[%s6245_s5 + $0x330] sm:$0xf] }
  0x33   : > { %1055 = vmatpush.bf16.msra.mxu1 %v3265_v2  ;;  %v4237_v47 = vld [vmem:[%s6245_s5 + $0x154] sm:$0xf]  ;;  %v3232_v50 = vld [vmem:[%s6245_s5 + $0xa0] sm:$0xf]  ;;  %v3234_v55 = vld [vmem:[%s6245_s5 + $0xa8] sm:$0xf0] }
  0x34   : > { %1073 = vmatpush.bf16.msra.mxu2 %v3269_v5  ;;  %v3704_v56 = vld [vmem:[%s6245_s5 + $0x320] sm:$0xf]  ;;  %v4298_v57 = vld [vmem:[%s6245_s5 + $0x324] sm:$0xf0]  ;;  %v4235_v60 = vld [vmem:[%s6245_s5 + $0x144] sm:$0xf] }
  0x35   : > { %1183 = vmatpush.bf16.msra.mxu3 %v3313_v38  ;;  %v4218_v38 = vld [vmem:[%s6245_s5 + $0xb4] sm:$0xf0]  ;;  %v3705_v59 = vor.u32 %v4298_v57, %v3704_v56  ;;  %v3394_v61 = vld [vmem:[%s6245_s5 + $0x148] sm:$0xf0]  ;;  %v3224_v62 = vld [vmem:[%s6245_s5 + $0x90] sm:$0xf] }
  0x36   : > { %1959 = vmatpush.bf16.msrb.mxu0 %v3737_v9  ;;  %v3397_v0 = vor.u32 %v4235_v60, %v3394_v61  ;;  %v4214_v2 = vld [vmem:[%s6245_s5 + $0x94] sm:$0xf0]  ;;  %v4213_v3 = vld [vmem:[%s6245_s5 + $0x94] sm:$0xf]  ;;  %v3226_v5 = vld [vmem:[%s6245_s5 + $0x98] sm:$0xf0] }
  0x37   : > { %806 = vperm.xlu0 %4510, %v752_v12   ;;  %v4221_v12 = vld [vmem:[%s6245_s5 + $0xd4] sm:$0xf]  ;;  %v3225_v9 = vor.u32 %v4214_v2, %v3224_v62  ;;  %v4294_v28 = vld [vmem:[%s6245_s5 + $0x304] sm:$0xf0]  ;;  %v4231_v33 = vld [vmem:[%s6245_s5 + $0x124] sm:$0xf] }
  0x38   : > { %811 = vperm.xlu1 %4511, %v753_v16   ;;  %v3728_v16 = vld [vmem:[%s6245_s5 + $0x350] sm:$0xf]  ;;  %v4209_v61 = vld [vmem:[%s6245_s5 + $0x74] sm:$0xf]  ;;  %v3338_v62 = vld [vmem:[%s6245_s5 + $0x78] sm:$0xf0] }
  0x39   : > { %816 = vperm.xlu2 %4512, %v754_v23   ;;  %1184 = vmatpush.bf16.msra.mxu3 %v3305_v42  ;;  %v4220_v23 = vld [vmem:[%s6245_s5 + $0xc4] sm:$0xf0]  ;;  %v3241_v42 = vor.u32 %v4218_v38, %v3240_v34  ;;  %v3378_v34 = vld [vmem:[%s6245_s5 + $0x128] sm:$0xf0]  ;;  %v3896_v57 = vld [vmem:[%s6245_s5 + $0x450] sm:$0xf] }
  0x3a   : > { %v3381_v38 = vor.u32 %v4231_v33, %v3378_v34  ;;  %s4544_s29 = sshra.s32 %s3073_s23, 4  ;;  %s4545_s29 = int_to_ptr.hbm [resolvable:$true] %s4544_s29 }
  0x3b   : > { %s4546_s28 = scalar_lea.hbm %s4545_s29, 1  ;;  %p4551_p0 = scmp.lt.s32.totalorder %s4545_s29, %s6285_s1 }
  0x3c   : > { %p4547_p11 = scmp.ne.s32.totalorder %s4545_s29, %s4546_s28  ;;  %p4552_p1 = scmp.lt.s32.totalorder %s4550_s24, %s4546_s28 }
  0x3d   : > { %1185 = vmatpush.bf16.msra.mxu3 %v3297_v45  ;;  %v4300_v45 = vld [vmem:[%s6245_s5 + $0x334] sm:$0xf0] }
  0x3e   : > { %3191 = vmatmul.msk.bf16.gmra.mxu0 %vm653_vm0, %v4184_v13  ;;  %v3257_v13 = vor.u32 %v4222_v11, %v3256_v10  ;;  %v3713_v46 = vor.u32 %v4300_v45, %v3712_v44  ;;  %v3229_v10 = vor.u32 %v4213_v3, %v3226_v5  ;;  %v3370_v44 = vld [vmem:[%s6245_s5 + $0x118] sm:$0xf0]  ;;  %p4548_p12 = pnand %p4547_p11, %p4724_p5  ;;  %p4553_p2 = por %p4552_p1, %p4551_p0 }
  0x3f   : > { %821 = vperm.xlu0 %4510, %v755_v14   ;;  %v3258_v14 = vld [vmem:[%s6245_s5 + $0xd8] sm:$0xf0] }
  0x40   : > { %826 = vperm.xlu1 %4511, %v756_v19   ;;  %v3261_v15 = vor.u32 %v4221_v12, %v3258_v14  ;;  %1056 = vmatpush.bf16.msra.mxu1 %v3257_v13  ;;  %v4241_v19 = vld [vmem:[%s6245_s5 + $0x174] sm:$0xf]  ;;  %v3696_v13 = vld [vmem:[%s6245_s5 + $0x310] sm:$0xf]  ;;  %v4296_v14 = vld [vmem:[%s6245_s5 + $0x314] sm:$0xf0]  ;;  %p4549_p13 = pneg %p4548_p12 }
  0x41   : > { %831 = vperm.xlu2 %4512, %v757_v25   ;;  %1186 = vmatpush.bf16.msra.mxu3 %v3289_v48  ;;  %v3250_v25 = vld [vmem:[%s6245_s5 + $0xc8] sm:$0xf0]  ;;  %v3402_v48 = vld [vmem:[%s6245_s5 + $0x158] sm:$0xf0] }
  0x42   : > { %1074 = vmatpush.bf16.msra.mxu2 %v3261_v15  ;;  %v3405_v49 = vor.u32 %v4237_v47, %v3402_v48  ;;  %v3904_v47 = vld [vmem:[%s6245_s5 + $0x460] sm:$0xf]  ;;  %v4340_v48 = vld [vmem:[%s6245_s5 + $0x464] sm:$0xf0]  ;;  %p4554_p3 = pnand %p4553_p2, %p4549_p13 }
  0x45   : > { %1187 = vmatpush.bf16.msra.mxu3 %v3281_v51  ;;  %v4216_v51 = vld [vmem:[%s6245_s5 + $0xa4] sm:$0xf0] }
  0x46   : > { %v3233_v54 = vor.u32 %v4216_v51, %v3232_v50  ;;  %v4227_v50 = vld [vmem:[%s6245_s5 + $0x104] sm:$0xf]  ;;  %v3362_v51 = vld [vmem:[%s6245_s5 + $0x108] sm:$0xf0] }
  0x47   : > { %836 = vperm.xlu0 %4510, %v758_v17   ;;  %v4304_v17 = vld [vmem:[%s6245_s5 + $0x354] sm:$0xf0] }
  0x48   : > { %v3729_v18 = vor.u32 %v4304_v17, %v3728_v16  ;;  %v3697_v16 = vor.u32 %v4296_v14, %v3696_v13  ;;  %v4233_v17 = vld [vmem:[%s6245_s5 + $0x134] sm:$0xf]  ;;  %v4207_v14 = vld [vmem:[%s6245_s5 + $0x64] sm:$0xf] }
  0x4a   : > { %1960 = vmatpush.bf16.msrb.mxu0 %v3729_v18  ;;  %v3386_v18 = vld [vmem:[%s6245_s5 + $0x138] sm:$0xf0] }
  0x4e   : > { %3192 = vmatmul.msk.bf16.gmra.mxu0 %vm653_vm0, %v4185_v20  ;;  %v3418_v20 = vld [vmem:[%s6245_s5 + $0x178] sm:$0xf0] }
  0x4f   : > { %v3421_v22 = vor.u32 %v4241_v19, %v3418_v20  ;;  %1961 = vmatpush.bf16.msrb.mxu0 %v3721_v31  ;;  %v3389_v19 = vor.u32 %v4233_v17, %v3386_v18  ;;  %v3216_v20 = vld [vmem:[%s6245_s5 + $0x80] sm:$0xf] }
  0x51   : > { %1349 = vmatpush.bf16.msrb.mxu3 %v3421_v22  ;;  %v4211_v22 = vld [vmem:[%s6245_s5 + $0x84] sm:$0xf] }
  0x53   : > { %1962 = vmatpush.bf16.msrb.mxu0 %v3713_v46 }
  0x55   : > { %1350 = vmatpush.bf16.msrb.mxu3 %v3413_v37 }
  0x57   : > { %1963 = vmatpush.bf16.msrb.mxu0 %v3705_v59 }
  0x59   : > { %1351 = vmatpush.bf16.msrb.mxu3 %v3405_v49  ;;  %v3905_v49 = vor.u32 %v4340_v48, %v3904_v47 }
  0x5b   : > { %1964 = vmatpush.bf16.msrb.mxu0 %v3697_v16  ;;  %v3408_v16 = vld [vmem:[%s6245_s5 + $0x160] sm:$0xf] }
  0x5d   : > { %1352 = vmatpush.bf16.msrb.mxu3 %v3397_v0  ;;  %v4242_v0 = vld [vmem:[%s6245_s5 + $0x174] sm:$0xf0] }
  0x5e   : > { %3193 = vmatmul.msk.bf16.gmra.mxu0 %vm653_vm0, %v4186_v21  ;;  %v3248_v21 = vld [vmem:[%s6245_s5 + $0xc0] sm:$0xf] }
  0x61   : > { %1353 = vmatpush.bf16.msrb.mxu3 %v3389_v19  ;;  %v4240_v19 = vld [vmem:[%s6245_s5 + $0x164] sm:$0xf0] }
  0x65   : > { %1354 = vmatpush.bf16.msrb.mxu3 %v3381_v38  ;;  %v3872_v38 = vld [vmem:[%s6245_s5 + $0x420] sm:$0xf] }
  0x6e   : > { %3194 = vmatmul.msk.bf16.gmra.mxu0 %vm653_vm0, %v4187_v24  ;;  %v4219_v24 = vld [vmem:[%s6245_s5 + $0xc4] sm:$0xf] }
  0x6f   : > { %v3253_v27 = vor.u32 %v4219_v24, %v3250_v25 }
  0x71   : > { %1075 = vmatpush.bf16.msra.mxu2 %v3253_v27  ;;  %v3688_v27 = vld [vmem:[%s6245_s5 + $0x300] sm:$0xf] }
  0x72   : > { %v3689_v32 = vor.u32 %v4294_v28, %v3688_v27  ;;  %v3322_v27 = vld [vmem:[%s6245_s5 + $0x58] sm:$0xf0] }
  0x74   : > { %1965 = vmatpush.bf16.msrb.mxu0 %v3689_v32  ;;  %v4238_v32 = vld [vmem:[%s6245_s5 + $0x154] sm:$0xf0] }
  0x7b   : > { %v772_v37 = vpop.permute.xlu2 %771 }
  0x7e   : > { %3195 = vmatmul.msk.bf16.gmra.mxu0 %vm653_vm0, %v4188_v26  ;;  %v3249_v26 = vor.u32 %v4220_v23, %v3248_v21  ;;  %v4212_v21 = vld [vmem:[%s6245_s5 + $0x84] sm:$0xf0] }
  0x7f   : > { %v3217_v25 = vor.u32 %v4212_v21, %v3216_v20  ;;  %v3409_v21 = vor.u32 %v4240_v19, %v3408_v16  ;;  %v3298_v16 = vld [vmem:[%s6245_s5 + $0x28] sm:$0xf0]  ;;  %v3376_v19 = vld [vmem:[%s6245_s5 + $0x120] sm:$0xf] }
  0x80   : > { %1057 = vmatpush.bf16.msra.mxu1 %v3249_v26  ;;  %v3218_v26 = vld [vmem:[%s6245_s5 + $0x88] sm:$0xf0] }
  0x81   : > { %v3221_v29 = vor.u32 %v4211_v22, %v3218_v26  ;;  %v4205_v26 = vld [vmem:[%s6245_s5 + $0x54] sm:$0xf] }
  0x82   : > { %v3325_v28 = vor.u32 %v4205_v26, %v3322_v27 }
  0x83   : > { %v777_v56 = vpop.permute.xlu2 %776 }
  0x84   : > { %1058 = vmatpush.bf16.msra.mxu1 %v3241_v42 }
  0x88   : > { %1059 = vmatpush.bf16.msra.mxu1 %v3233_v54 }
  0x8c   : > { %1060 = vmatpush.bf16.msra.mxu1 %v3225_v9 }
  0x8e   : > { %3196 = vmatmul.msk.bf16.gmra.mxu0 %vm653_vm0, %v4189_v39  ;;  %v4217_v39 = vld [vmem:[%s6245_s5 + $0xb4] sm:$0xf] }
  0x8f   : > { %v3245_v43 = vor.u32 %v4217_v39, %v3242_v40  ;;  %v3912_v39 = vld [vmem:[%s6245_s5 + $0x470] sm:$0xf]  ;;  %v4342_v40 = vld [vmem:[%s6245_s5 + $0x474] sm:$0xf0] }
  0x90   : > { %1061 = vmatpush.bf16.msra.mxu1 %v3217_v25  ;;  %v3913_v42 = vor.u32 %v4342_v40, %v3912_v39  ;;  %v4332_v39 = vld [vmem:[%s6245_s5 + $0x424] sm:$0xf0] }
  0x91   : > { %v4901_v4 = vpop.permute.xlu0 %781  ;;  %1076 = vmatpush.bf16.msra.mxu2 %v3245_v43  ;;  %v4229_v43 = vld [vmem:[%s6245_s5 + $0x114] sm:$0xf]  ;;  %v3873_v40 = vor.u32 %v4332_v39, %v3872_v38 }
  0x92   : > { %v4903_v6 = vpop.permute.xlu1 %791  ;;  %v3373_v45 = vor.u32 %v4229_v43, %v3370_v44  ;;  %2283 = vmatpush.bf16.msra.mxu0 %v3913_v42  ;;  %v4203_v42 = vld [vmem:[%s6245_s5 + $0x44] sm:$0xf]  ;;  %v3314_v43 = vld [vmem:[%s6245_s5 + $0x48] sm:$0xf0]  ;;  %v3392_v44 = vld [vmem:[%s6245_s5 + $0x140] sm:$0xf] }
  0x93   : > { %v3317_v48 = vor.u32 %v4203_v42, %v3314_v43 }
  0x94   : > { %1355 = vmatpush.bf16.msrb.mxu3 %v3373_v45 }
  0x96   : > { %2284 = vmatpush.bf16.msra.mxu0 %v3905_v49  ;;  %v4236_v49 = vld [vmem:[%s6245_s5 + $0x144] sm:$0xf0] }
  0x99   : > { %v4953_v30 = vpop.permute.xlu0 %786 }
  0x9a   : > { %v4964_v36 = vpop.permute.xlu1 %796 }
  0x9e   : > { %3197 = vmatmul.msk.bf16.gmra.mxu0 %vm653_vm0, %v4190_v52  ;;  %v4215_v52 = vld [vmem:[%s6245_s5 + $0xa4] sm:$0xf] }
  0x9f   : > { %v3237_v58 = vor.u32 %v4215_v52, %v3234_v55 }
  0xa1   : > { %1077 = vmatpush.bf16.msra.mxu2 %v3237_v58  ;;  %v762_v11 = vpop.permute.xlu0 %761  ;;  %v4338_v58 = vld [vmem:[%s6245_s5 + $0x454] sm:$0xf0] }
  0xa2   : > { %v767_v12 = vpop.permute.xlu1 %766  ;;  %v3897_v60 = vor.u32 %v4338_v58, %v3896_v57 }
  0xa4   : > { %2285 = vmatpush.bf16.msra.mxu0 %v3897_v60  ;;  %v4330_v60 = vld [vmem:[%s6245_s5 + $0x414] sm:$0xf0] }
  0xa5   : > { %1078 = vmatpush.bf16.msra.mxu2 %v3229_v10  ;;  %v3888_v10 = vld [vmem:[%s6245_s5 + $0x440] sm:$0xf] }
  0xa9   : > { %1079 = vmatpush.bf16.msra.mxu2 %v3221_v29  ;;  %v3400_v29 = vld [vmem:[%s6245_s5 + $0x150] sm:$0xf] }
  0xaa   : > { %v3401_v34 = vor.u32 %v4238_v32, %v3400_v29  ;;  %v3290_v29 = vld [vmem:[%s6245_s5 + $0x18] sm:$0xf0]  ;;  %v3368_v32 = vld [vmem:[%s6245_s5 + $0x110] sm:$0xf] }
  0xab   : > { %v687_v35 = vpop.f32.mrf.mxu0 }
  0xac   : > { %v688_v53 = vadd.f32 %v4978_v41, %v687_v35 }
  0xae   : > { %v727_v7 = vmax.f32 %v688_v53, 0.0  ;;  %v3365_v53 = vor.u32 %v4227_v50, %v3362_v51 }
  0xb0   : > { %v839_v23 = vmul.f32 %v762_v11, %v727_v7  ;;  %1356 = vmatpush.bf16.msrb.mxu3 %v3365_v53  ;;  %v3341_v7 = vor.u32 %v4209_v61, %v3338_v62  ;;  %v4336_v11 = vld [vmem:[%s6245_s5 + $0x444] sm:$0xf0]  ;;  %v3393_v53 = vor.u32 %v4236_v49, %v3392_v44  ;;  %v4201_v62 = vld [vmem:[%s6245_s5 + $0x34] sm:$0xf] }
  0xb1   : > { %v3889_v13 = vor.u32 %v4336_v11, %v3888_v10 }
  0xb2   : > { %1198 = vmatpush.bf16.msrb.mxu1 %v3341_v7 }
  0xb3   : > { %v689_v63 = vpop.f32.mrf.mxu0  ;;  %2286 = vmatpush.bf16.msra.mxu0 %v3889_v13 }
  0xb4   : > { %v690_v8 = vadd.f32 %v4978_v41, %v689_v63  ;;  %v3416_v63 = vld [vmem:[%s6245_s5 + $0x170] sm:$0xf] }
  0xb5   : > { %v3417_v9 = vor.u32 %v4242_v0, %v3416_v63  ;;  %v3306_v63 = vld [vmem:[%s6245_s5 + $0x38] sm:$0xf0]  ;;  %v3384_v0 = vld [vmem:[%s6245_s5 + $0x130] sm:$0xf] }
  0xb6   : > { %v728_v15 = vmax.f32 %v690_v8, 0.0 }
  0xb7   : > { %1331 = vmatpush.bf16.msrb.mxu2 %v3417_v9  ;;  %v3309_v9 = vor.u32 %v4201_v62, %v3306_v63  ;;  %v3502_v62 = vld [vmem:[%s6245_s5 + $0x1f8] sm:$0xf0]  ;;  %v3576_v63 = vld [vmem:[%s6245_s5 + $0x260] sm:$0xf] }
  0xb8   : > { %v840_v24 = vmul.f32 %v767_v12, %v728_v15  ;;  %v3330_v15 = vld [vmem:[%s6245_s5 + $0x68] sm:$0xf0] }
  0xb9   : > { %v3333_v18 = vor.u32 %v4207_v14, %v3330_v15  ;;  %v4328_v14 = vld [vmem:[%s6245_s5 + $0x404] sm:$0xf0]  ;;  %v4199_v15 = vld [vmem:[%s6245_s5 + $0x24] sm:$0xf] }
  0xba   : > { %v5060_v31 = vpack.c.bf16 %v840_v24, %v839_v23  ;;  %v3880_v23 = vld [vmem:[%s6245_s5 + $0x430] sm:$0xf]  ;;  %v4334_v24 = vld [vmem:[%s6245_s5 + $0x434] sm:$0xf0] }
  0xbb   : > { %v692_v35 = vpop.f32.mrf.mxu0  ;;  %1199 = vmatpush.bf16.msrb.mxu1 %v3333_v18  ;;  %v3881_v25 = vor.u32 %v4334_v24, %v3880_v23  ;;  %1332 = vmatpush.bf16.msrb.mxu2 %v3409_v21  ;;  %v3301_v23 = vor.u32 %v4199_v15, %v3298_v16 }
  0xbc   : > { %4411 = vst [vmem:[#allocation2 + $0x30] sm:$0xff] %v5060_v31   ;;  %1188 = vmatmul.bf16.vlgmr.msra.gmra.mxu3 %v5060_v31  ;;  %v693_v46 = vadd.f32 %v4978_v41, %v692_v35  ;;  %v1237_v21 = vshll.u32 %v5060_v31, 16  ;;  %v1235_v38 = vshrl.u32 %v5060_v31, 16 }
  0xbd   : > { %2287 = vmatpush.bf16.msra.mxu0 %v3881_v25 }
  0xbe   : > { %v729_v54 = vmax.f32 %v693_v46, 0.0 }
  0xbf   : > { %1200 = vmatpush.bf16.msrb.mxu1 %v3325_v28  ;;  %1333 = vmatpush.bf16.msrb.mxu2 %v3401_v34  ;;  %v4197_v28 = vld [vmem:[%s6245_s5 + $0x14] sm:$0xf] }
  0xc0   : > { %v841_v2 = vmul.f32 %v772_v37, %v729_v54  ;;  %v3293_v34 = vor.u32 %v4197_v28, %v3290_v29 }
  0xc1   : > { %2288 = vmatpush.bf16.msra.mxu0 %v3873_v40 }
  0xc3   : > { %v694_v52 = vpop.f32.mrf.mxu0  ;;  %v4463_v5 = vld [vmem:[#allocation2 + $0x30] sm:$0xf0]  ;;  %v4464_v8 = vld [vmem:[#allocation2 + $0x30] sm:$0xc]  ;;  %1201 = vmatpush.bf16.msrb.mxu1 %v3317_v48  ;;  %1334 = vmatpush.bf16.msrb.mxu2 %v3393_v53 }
  0xc4   : > { %v695_v55 = vadd.f32 %v4978_v41, %v694_v52  ;;  %v4465_v20 = vor.u32 %v4464_v8, %v4463_v5  ;;  %v4234_v8 = vld [vmem:[%s6245_s5 + $0x134] sm:$0xf0] }
  0xc5   : > { %v3385_v10 = vor.u32 %v4234_v8, %v3384_v0  ;;  %v4274_v0 = vld [vmem:[%s6245_s5 + $0x264] sm:$0xf0] }
  0xc6   : > { %v730_v59 = vmax.f32 %v695_v55, 0.0  ;;  %v1860_v33 = vshrl.u32 %v4465_v20, 16  ;;  %v1863_v37 = vshll.u32 %v4465_v20, 16  ;;  %v4232_v20 = vld [vmem:[%s6245_s5 + $0x124] sm:$0xf0] }
  0xc7   : > { %1202 = vmatpush.bf16.msrb.mxu1 %v3309_v9  ;;  %1335 = vmatpush.bf16.msrb.mxu2 %v3385_v10  ;;  %v3377_v24 = vor.u32 %v4232_v20, %v3376_v19  ;;  %v4257_v8 = vld [vmem:[%s6245_s5 + $0x1e4] sm:$0xf0]  ;;  %v4256_v9 = vld [vmem:[%s6245_s5 + $0x1e4] sm:$0xf]  ;;  %v4255_v19 = vld [vmem:[%s6245_s5 + $0x1d4] sm:$0xf0] }
  0xc8   : > { %v842_v3 = vmul.f32 %v777_v56, %v730_v59  ;;  %v1862_v54 = vrot.slane %v1860_v33, 2  ;;  %v1865_v58 = vrot.slane %v1863_v37, 3  ;;  %v3864_v59 = vld [vmem:[%s6245_s5 + $0x410] sm:$0xf]  ;;  %v1239_v33 = vrot.slane %v1237_v21, 1 }
  0xc9   : > { %v3865_v61 = vor.u32 %v4330_v60, %v3864_v59  ;;  %v3500_v59 = vld [vmem:[%s6245_s5 + $0x1f0] sm:$0xf]  ;;  %v4259_v60 = vld [vmem:[%s6245_s5 + $0x1f4] sm:$0xf0]  ;;  %v4254_v20 = vld [vmem:[%s6245_s5 + $0x1d4] sm:$0xf] }
  0xca   : > { %v4415_v12 = vpack.c.bf16 %v842_v3, %v841_v2  ;;  %v1240_v44 = vor.u32 %v1239_v33, %v1235_v38  ;;  %v3848_v38 = vld [vmem:[#allocation2 + $0x30] sm:$0x8] }
  0xcb   : > { %v697_v17 = vpop.f32.mrf.mxu0  ;;  %2289 = vmatpush.bf16.msra.mxu0 %v3865_v61  ;;  %1203 = vmatpush.bf16.msrb.mxu1 %v3301_v23  ;;  %v4258_v61 = vld [vmem:[%s6245_s5 + $0x1f4] sm:$0xf] }
  0xcc   : > { %4455 = vst [vmem:[#allocation2] sm:$0xff] %v4415_v12   ;;  %v698_v22 = vadd.f32 %v4978_v41, %v697_v17  ;;  %v1866_v17 = vor.u32 %v1865_v58, %v1862_v54  ;;  %1336 = vmatpush.bf16.msrb.mxu2 %v3377_v24  ;;  %v4276_v54 = vld [vmem:[%s6245_s5 + $0x274] sm:$0xf0]  ;;  %v3560_v24 = vld [vmem:[%s6245_s5 + $0x240] sm:$0xf] }
  0xce   : > { %v731_v35 = vmax.f32 %v698_v22, 0.0 }
  0xcf   : > { %1204 = vmatpush.bf16.msrb.mxu1 %v3293_v34 }
  0xd0   : > { %v843_v2 = vmul.f32 %v4901_v4, %v731_v35  ;;  %v3856_v4 = vld [vmem:[%s6245_s5 + $0x400] sm:$0xf]  ;;  %v4230_v35 = vld [vmem:[%s6245_s5 + $0x114] sm:$0xf0] }
  0xd1   : > { %v3857_v22 = vor.u32 %v4328_v14, %v3856_v4  ;;  %v3369_v37 = vor.u32 %v4230_v35, %v3368_v32  ;;  %v4272_v14 = vld [vmem:[%s6245_s5 + $0x254] sm:$0xf0] }
  0xd3   : > { %v699_v45 = vpop.f32.mrf.mxu0  ;;  %v927_v46 = vld [vmem:[#allocation2] sm:$0x3]  ;;  %2290 = vmatpush.bf16.msra.mxu0 %v3857_v22  ;;  %1337 = vmatpush.bf16.msrb.mxu2 %v3369_v37  ;;  %v4326_v4 = vld [vmem:[#allocation2] sm:$0x10]  ;;  %v3486_v22 = vld [vmem:[%s6245_s5 + $0x1d8] sm:$0xf0] }
  0xd4   : > { %v1834_v47 = vld [vmem:[#allocation2] sm:$0xf]  ;;  %v700_v50 = vadd.f32 %v4978_v41, %v699_v45  ;;  %v1095_v51 = vunpack.c.l.b16 %v927_v46  ;;  %v4195_v45 = vld [vmem:[%s6245_s5 + $0x4] sm:$0xf]  ;;  %v3282_v46 = vld [vmem:[%s6245_s5 + $0x8] sm:$0xf0]  ;;  %v3489_v23 = vor.u32 %v4254_v20, %v3486_v22 }
  0xd5   : > { %v1855_v52 = vunpack.c.l.b16 %v1834_v47  ;;  %v3360_v47 = vld [vmem:[%s6245_s5 + $0x100] sm:$0xf]  ;;  %v3285_v49 = vor.u32 %v4195_v45, %v3282_v46  ;;  %v3452_v20 = vld [vmem:[%s6245_s5 + $0x190] sm:$0xf]  ;;  %v4246_v22 = vld [vmem:[%s6245_s5 + $0x194] sm:$0xf] }
  0xd6   : > { %v732_v55 = vmax.f32 %v700_v50, 0.0  ;;  %v5170_v56 = vpack.c.b16 %v1095_v51, %v1095_v51  ;;  %v4228_v50 = vld [vmem:[%s6245_s5 + $0x104] sm:$0xf0]  ;;  %v3584_v51 = vld [vmem:[%s6245_s5 + $0x270] sm:$0xf] }
  0xd7   : > { %v1857_v57 = vpack.c.b16 %v1855_v52, %v1855_v52  ;;  %v3361_v53 = vor.u32 %v4228_v50, %v3360_v47  ;;  %1205 = vmatpush.bf16.msrb.mxu1 %v3285_v49  ;;  %v3585_v58 = vor.u32 %v4276_v54, %v3584_v51  ;;  %v3552_v49 = vld [vmem:[%s6245_s5 + $0x230] sm:$0xf]  ;;  %v807_v50 = vpop.permute.xlu0 %806  ;;  %v802_v51 = vpop.permute.xlu2 %801 }
  0xd8   : > { %v844_v3 = vmul.f32 %v4953_v30, %v732_v55  ;;  %1193 = vmatmul.bf16.gmra.mxu3 %v5170_v56  ;;  %v1242_v26 = vshll.u32 %v5170_v56, 16  ;;  %v1246_v37 = vshrl.u32 %v5170_v56, 16 }
  0xd9   : > { %v1868_v5 = vshrl.u32 %v1857_v57, 16  ;;  %v1871_v7 = vshll.u32 %v1857_v57, 16  ;;  %1338 = vmatpush.bf16.msrb.mxu2 %v3361_v53  ;;  %1635 = vmatpush.bf16.msra.mxu3 %v3585_v58 }
  0xda   : > { %v4420_v11 = vpack.c.bf16 %v844_v3, %v843_v2  ;;  %v5234_v40 = vrot.slane %v1242_v26, 1  ;;  %v3505_v3 = vor.u32 %v4258_v61, %v3502_v62  ;;  %v4270_v26 = vld [vmem:[%s6245_s5 + $0x244] sm:$0xf0] }
  0xdb   : > { %v1870_v12 = vrot.slane %v1868_v5, 2  ;;  %v1873_v13 = vrot.slane %v1871_v7, 3  ;;  %v702_v30 = vpop.f32.mrf.mxu0  ;;  %v3577_v5 = vor.u32 %v4274_v0, %v3576_v63  ;;  %v3492_v7 = vld [vmem:[%s6245_s5 + $0x1e0] sm:$0xf]  ;;  %v3561_v32 = vor.u32 %v4270_v26, %v3560_v24  ;;  %v3470_v0 = vld [vmem:[%s6245_s5 + $0x1b8] sm:$0xf0] }
  0xdc   : > { %4456 = vst [vmem:[#allocation2 + $0x18] sm:$0xff] %v4420_v11   ;;  %1062 = vmatmul.bf16.vlgmr.msra.gmra.mxu1 %v4420_v11  ;;  %1080 = vmatmul.bf16.vlgmr.msra.gmra.mxu2 %v4420_v11  ;;  %v703_v27 = vadd.f32 %v4978_v41, %v702_v30  ;;  %v5254_v52 = vsel %vm1233_vm2, %v1240_v44, %v5234_v40  ;;  %v3494_v11 = vld [vmem:[%s6245_s5 + $0x1e8] sm:$0xf0]  ;;  %v4252_v44 = vld [vmem:[%s6245_s5 + $0x1c4] sm:$0xf] }
  0xdd   : > { %v5205_v18 = vor.u32 %v1873_v13, %v1870_v12  ;;  %1501 = vmatpush.bf16.msra.mxu2 %v3505_v3  ;;  %1636 = vmatpush.bf16.msra.mxu3 %v3577_v5  ;;  %v3493_v10 = vor.u32 %v4257_v8, %v3492_v7  ;;  %v3568_v12 = vld [vmem:[%s6245_s5 + $0x250] sm:$0xf]  ;;  %v3852_v13 = vld [vmem:[#allocation2] sm:$0xf]  ;;  %v3497_v30 = vor.u32 %v4256_v9, %v3494_v11  ;;  %v4266_v3 = vld [vmem:[%s6245_s5 + $0x224] sm:$0xf0] }
  0xde   : > { %v733_v42 = vmax.f32 %v703_v27, 0.0  ;;  %v3569_v16 = vor.u32 %v4272_v14, %v3568_v12  ;;  %v3853_v29 = vor.u32 %v4326_v4, %v3852_v13  ;;  %v5336_v53 = vor.u32 %v1246_v37, %v5234_v40  ;;  %v3468_v40 = vld [vmem:[%s6245_s5 + $0x1b0] sm:$0xf]  ;;  %v4249_v11 = vld [vmem:[%s6245_s5 + $0x1a4] sm:$0xf0] }
  0xdf   : > { %v5216_v25 = vsel %vm1858_vm1, %v1866_v17, %v5205_v18  ;;  %v3484_v17 = vld [vmem:[%s6245_s5 + $0x1d0] sm:$0xf]  ;;  %v4248_v12 = vld [vmem:[%s6245_s5 + $0x1a4] sm:$0xf]  ;;  %v3454_v24 = vld [vmem:[%s6245_s5 + $0x198] sm:$0xf0] }
  0xe0   : > { %1966 = vmatmul.bf16.vlgmr.msrb.gmra.mxu0 %v5216_v25  ;;  %v845_v55 = vmul.f32 %v4903_v6, %v733_v42  ;;  %v3485_v21 = vor.u32 %v4255_v19, %v3484_v17  ;;  %v3476_v42 = vld [vmem:[%s6245_s5 + $0x1c0] sm:$0xf]  ;;  %v3536_v14 = vld [vmem:[%s6245_s5 + $0x210] sm:$0xf]  ;;  %v3457_v26 = vor.u32 %v4246_v22, %v3454_v24  ;;  %v4245_v37 = vld [vmem:[%s6245_s5 + $0x184] sm:$0xf0] }
  0xe1   : > { %1502 = vmatpush.bf16.msra.mxu2 %v3497_v30  ;;  %1637 = vmatpush.bf16.msra.mxu3 %v3569_v16  ;;  %v3462_v30 = vld [vmem:[%s6245_s5 + $0x1a8] sm:$0xf0]  ;;  %v4264_v16 = vld [vmem:[%s6245_s5 + $0x214] sm:$0xf0]  ;;  %v4285_v22 = vld [vmem:[%s6245_s5 + $0x2c4] sm:$0xf] }
  0xe2   : > { %v3537_v19 = vor.u32 %v4264_v16, %v3536_v14  ;;  %v4269_v16 = vld [vmem:[%s6245_s5 + $0x244] sm:$0xf] }
  0xe3   : > { %v704_v39 = vpop.f32.mrf.mxu0 }
  0xe4   : > { %v705_v43 = vadd.f32 %v4978_v41, %v704_v39  ;;  %v4325_v39 = vld [vmem:[#allocation2 + $0x30] sm:$0xf0] }
  0xe5   : > { %1503 = vmatpush.bf16.msra.mxu2 %v3489_v23  ;;  %1638 = vmatpush.bf16.msra.mxu3 %v3561_v32  ;;  %v3849_v54 = vor.u32 %v4325_v39, %v3848_v38  ;;  %v4244_v38 = vld [vmem:[%s6245_s5 + $0x184] sm:$0xf] }
  0xe6   : > { %v734_v48 = vmax.f32 %v705_v43, 0.0  ;;  %v4253_v43 = vld [vmem:[%s6245_s5 + $0x1c4] sm:$0xf0] }
  0xe7   : > { %v3477_v47 = vor.u32 %v4253_v43, %v3476_v42  ;;  %v2198_v9 = vrot.slane %v3849_v54, 3  ;;  %v3446_v43 = vld [vmem:[%s6245_s5 + $0x188] sm:$0xf0] }
  0xe8   : > { %v846_v57 = vmul.f32 %v4964_v36, %v734_v48  ;;  %1357 = vmatmul.bf16.vlgmr.msrb.gmra.mxu3 %v5254_v52  ;;  %v3501_v36 = vor.u32 %v4259_v60, %v3500_v59  ;;  %v3478_v48 = vld [vmem:[%s6245_s5 + $0x1c8] sm:$0xf0]  ;;  %v5341_v60 = vrot.slane %v3853_v29, 3 }
  0xea   : > { %v4425_v6 = vpack.c.bf16 %v846_v57, %v845_v55  ;;  %1483 = vmatpush.bf16.msra.mxu1 %v3501_v36  ;;  %v3481_v55 = vor.u32 %v4252_v44, %v3478_v48  ;;  %v4268_v57 = vld [vmem:[%s6245_s5 + $0x234] sm:$0xf0]  ;;  %v4250_v36 = vld [vmem:[%s6245_s5 + $0x1b4] sm:$0xf]  ;;  %v5372_v13 = vsel %vm2197_vm3, %v2198_v9, %v5341_v60  ;;  %v812_v44 = vpop.permute.xlu1 %811  ;;  %v3648_v9 = vld [vmem:[%s6245_s5 + $0x2d0] sm:$0xf] }
  0xeb   : > { %v707_v2 = vpop.f32.mrf.mxu0  ;;  %v3553_v61 = vor.u32 %v4268_v57, %v3552_v49  ;;  %v3473_v7 = vor.u32 %v4250_v36, %v3470_v0  ;;  %v4275_v49 = vld [vmem:[%s6245_s5 + $0x274] sm:$0xf]  ;;  %v3666_v57 = vld [vmem:[%s6245_s5 + $0x2f8] sm:$0xf0]  ;;  %v4289_v0 = vld [vmem:[%s6245_s5 + $0x2e4] sm:$0xf] }
  0xec   : > { %4457 = vst [vmem:[#allocation2 + $0x10] sm:$0xff] %v4425_v6   ;;  %v708_v15 = vadd.f32 %v4978_v41, %v707_v2  ;;  %v4251_v6 = vld [vmem:[%s6245_s5 + $0x1b4] sm:$0xf0]  ;;  %1504 = vmatpush.bf16.msra.mxu2 %v3481_v55  ;;  %v3544_v2 = vld [vmem:[%s6245_s5 + $0x220] sm:$0xf] }
  0xed   : > { %1639 = vmatpush.bf16.msra.mxu3 %v3553_v61  ;;  %v3469_v63 = vor.u32 %v4251_v6, %v3468_v40  ;;  %v3545_v8 = vor.u32 %v4266_v3, %v3544_v2  ;;  %v4273_v40 = vld [vmem:[%s6245_s5 + $0x264] sm:$0xf]  ;;  %v3578_v6 = vld [vmem:[%s6245_s5 + $0x268] sm:$0xf0] }
  0xee   : > { %1484 = vmatpush.bf16.msra.mxu1 %v3493_v10  ;;  %v735_v33 = vmax.f32 %v708_v15, 0.0  ;;  %v3460_v10 = vld [vmem:[%s6245_s5 + $0x1a0] sm:$0xf]  ;;  %v3465_v15 = vor.u32 %v4248_v12, %v3462_v30  ;;  %v3581_v36 = vor.u32 %v4273_v40, %v3578_v6  ;;  %v3658_v3 = vld [vmem:[%s6245_s5 + $0x2e8] sm:$0xf0] }
  0xef   : > { %v3461_v4 = vor.u32 %v4249_v11, %v3460_v10  ;;  %v4288_v10 = vld [vmem:[%s6245_s5 + $0x2d4] sm:$0xf0]  ;;  %v3650_v30 = vld [vmem:[%s6245_s5 + $0x2d8] sm:$0xf0]  ;;  %v3616_v40 = vld [vmem:[%s6245_s5 + $0x290] sm:$0xf] }
  0xf0   : > { %1971 = vmatmul.bf16.gmra.mxu0 %v5205_v18  ;;  %v847_v58 = vmul.f32 %v802_v51, %v735_v33  ;;  %1505 = vmatpush.bf16.msra.mxu2 %v3473_v7  ;;  %v3664_v51 = vld [vmem:[%s6245_s5 + $0x2f0] sm:$0xf]  ;;  %v3661_v7 = vor.u32 %v4289_v0, %v3658_v3  ;;  %v3649_v14 = vor.u32 %v4288_v10, %v3648_v9  ;;  %v4280_v6 = vld [vmem:[%s6245_s5 + $0x294] sm:$0xf0]  ;;  %v4278_v9 = vld [vmem:[%s6245_s5 + $0x284] sm:$0xf0] }
  0xf1   : > { %1640 = vmatpush.bf16.msra.mxu3 %v3545_v8  ;;  %v3570_v8 = vld [vmem:[%s6245_s5 + $0x258] sm:$0xf0]  ;;  %v3617_v3 = vor.u32 %v4280_v6, %v3616_v40  ;;  %v3800_v40 = vld [vmem:[%s6245_s5 + $0x3c0] sm:$0xf]  ;;  %v4318_v6 = vld [vmem:[%s6245_s5 + $0x3c4] sm:$0xf0] }
  0xf2   : > { %1485 = vmatpush.bf16.msra.mxu1 %v3485_v21  ;;  %v4247_v21 = vld [vmem:[%s6245_s5 + $0x194] sm:$0xf0] }
  0xf3   : > { %v709_v27 = vpop.f32.mrf.mxu0  ;;  %v946_v28 = vld [vmem:[#allocation2 + $0x10] sm:$0x3]  ;;  %v3453_v23 = vor.u32 %v4247_v21, %v3452_v20  ;;  %v4286_v20 = vld [vmem:[%s6245_s5 + $0x2c4] sm:$0xf0] }
  0xf4   : > { %v710_v34 = vadd.f32 %v4978_v41, %v709_v27  ;;  %v969_v35 = vunpack.c.l.b16 %v946_v28  ;;  %1506 = vmatpush.bf16.msra.mxu2 %v3465_v15  ;;  %v3528_v27 = vld [vmem:[%s6245_s5 + $0x200] sm:$0xf]  ;;  %v4262_v28 = vld [vmem:[%s6245_s5 + $0x204] sm:$0xf0] }
  0xf5   : > { %1641 = vmatpush.bf16.msra.mxu3 %v3537_v19  ;;  %v3529_v32 = vor.u32 %v4262_v28, %v3528_v27  ;;  %v3640_v19 = vld [vmem:[%s6245_s5 + $0x2c0] sm:$0xf] }
  0xf6   : > { %v736_v45 = vmax.f32 %v710_v34, 0.0  ;;  %v971_v46 = vpack.c.b16 %v969_v35, %v969_v35  ;;  %1486 = vmatpush.bf16.msra.mxu1 %v3477_v47  ;;  %v3444_v35 = vld [vmem:[%s6245_s5 + $0x180] sm:$0xf]  ;;  %v3641_v28 = vor.u32 %v4286_v20, %v3640_v19 }
  0xf7   : > { %v3445_v42 = vor.u32 %v4245_v37, %v3444_v35 }
  0xf8   : > { %v848_v59 = vmul.f32 %v807_v50, %v736_v45  ;;  %1067 = vmatmul.bf16.gmra.mxu1 %v971_v46  ;;  %1085 = vmatmul.bf16.gmra.mxu2 %v971_v46  ;;  %v817_v45 = vpop.permute.xlu2 %816  ;;  %v3449_v46 = vor.u32 %v4244_v38, %v3446_v43  ;;  %v3586_v50 = vld [vmem:[%s6245_s5 + $0x278] sm:$0xf0]  ;;  %v4267_v38 = vld [vmem:[%s6245_s5 + $0x234] sm:$0xf] }
  0xf9   : > { %1362 = vmatmul.bf16.gmra.mxu3 %v5336_v53  ;;  %1507 = vmatpush.bf16.msra.mxu2 %v3457_v26  ;;  %v3589_v55 = vor.u32 %v4275_v49, %v3586_v50  ;;  %v4265_v49 = vld [vmem:[%s6245_s5 + $0x224] sm:$0xf]  ;;  %v3546_v50 = vld [vmem:[%s6245_s5 + $0x228] sm:$0xf0] }
  0xfa   : > { %v4430_v62 = vpack.c.bf16 %v848_v59, %v847_v58  ;;  %1487 = vmatpush.bf16.msra.mxu1 %v3469_v63  ;;  %1642 = vmatpush.bf16.msra.mxu3 %v3529_v32  ;;  %v4290_v63 = vld [vmem:[%s6245_s5 + $0x2e4] sm:$0xf0] }
  0xfb   : > { %v712_v5 = vpop.f32.mrf.mxu0 }
  0xfc   : > { %4458 = vst [vmem:[#allocation2 + $0x8] sm:$0xff] %v4430_v62   ;;  %v713_v17 = vadd.f32 %v4978_v41, %v712_v5  ;;  %v3656_v62 = vld [vmem:[%s6245_s5 + $0x2e0] sm:$0xf]  ;;  %v4271_v5 = vld [vmem:[%s6245_s5 + $0x254] sm:$0xf] }
  0xfd   : > { %1508 = vmatpush.bf16.msra.mxu2 %v3449_v46  ;;  %v3657_v2 = vor.u32 %v4290_v63, %v3656_v62  ;;  %v3573_v12 = vor.u32 %v4271_v5, %v3570_v8  ;;  %v3618_v62 = vld [vmem:[%s6245_s5 + $0x298] sm:$0xf0]  ;;  %v3608_v8 = vld [vmem:[%s6245_s5 + $0x280] sm:$0xf] }
  0xfe   : > { %1488 = vmatpush.bf16.msra.mxu1 %v3461_v4  ;;  %v737_v33 = vmax.f32 %v713_v17, 0.0  ;;  %v4287_v4 = vld [vmem:[%s6245_s5 + $0x2d4] sm:$0xf]  ;;  %v3562_v17 = vld [vmem:[%s6245_s5 + $0x248] sm:$0xf0]  ;;  %v3609_v19 = vor.u32 %v4278_v9, %v3608_v8 }
  0xff   : > { %v3653_v15 = vor.u32 %v4287_v4, %v3650_v30  ;;  %v3565_v27 = vor.u32 %v4269_v16, %v3562_v17  ;;  %v3610_v4 = vld [vmem:[%s6245_s5 + $0x288] sm:$0xf0]  ;;  %v4299_v9 = vld [vmem:[%s6245_s5 + $0x334] sm:$0xf] }
 0x100   : > { %2291 = vmatmul.bf16.vlgmr.msra.gmra.mxu0 %v5372_v13  ;;  %v849_v47 = vmul.f32 %v812_v44, %v737_v33  ;;  %v822_v33 = vpop.permute.xlu0 %821 }
 0x102   : > { %1489 = vmatpush.bf16.msra.mxu1 %v3453_v23  ;;  %v3642_v23 = vld [vmem:[%s6245_s5 + $0x2c8] sm:$0xf0] }
 0x103   : > { %v714_v29 = vpop.f32.mrf.mxu0  ;;  %v3645_v32 = vor.u32 %v4285_v22, %v3642_v23  ;;  %v5572_v17 = vld [vmem:[#allocation2 + $0x8] sm:$0xff]  ;;  %v832_v22 = vpop.permute.xlu2 %831 }
 0x104   : > { %v715_v34 = vadd.f32 %v4978_v41, %v714_v29 }
 0x106   : > { %v738_v39 = vmax.f32 %v715_v34, 0.0  ;;  %1490 = vmatpush.bf16.msra.mxu1 %v3445_v42  ;;  %v827_v34 = vpop.permute.xlu1 %826  ;;  %v3632_v42 = vld [vmem:[%s6245_s5 + $0x2b0] sm:$0xf] }
 0x108   : > { %v850_v48 = vmul.f32 %v817_v45, %v738_v39  ;;  %1206 = vmatmul.bf16.vlgmr.msrb.gmra.mxu1 %v5060_v31  ;;  %1339 = vmatmul.bf16.vlgmr.msrb.gmra.mxu2 %v5254_v52  ;;  %v4292_v31 = vld [vmem:[%s6245_s5 + $0x2f4] sm:$0xf0]  ;;  %v4291_v52 = vld [vmem:[%s6245_s5 + $0x2f4] sm:$0xf]  ;;  %v3554_v39 = vld [vmem:[%s6245_s5 + $0x238] sm:$0xf0] }
 0x109   : > { %v3665_v59 = vor.u32 %v4292_v31, %v3664_v51  ;;  %v3669_v61 = vor.u32 %v4291_v52, %v3666_v57  ;;  %v3557_v44 = vor.u32 %v4267_v38, %v3554_v39  ;;  %v3634_v45 = vld [vmem:[%s6245_s5 + $0x2b8] sm:$0xf0]  ;;  %v3624_v51 = vld [vmem:[%s6245_s5 + $0x2a0] sm:$0xf]  ;;  %v3549_v31 = vor.u32 %v4265_v49, %v3546_v50  ;;  %v3626_v57 = vld [vmem:[%s6245_s5 + $0x2a8] sm:$0xf0] }
 0x10a   : > { %v4435_v54 = vpack.c.bf16 %v850_v48, %v849_v47  ;;  %1653 = vmatpush.bf16.msrb.mxu1 %v3589_v55  ;;  %v4281_v55 = vld [vmem:[%s6245_s5 + $0x2a4] sm:$0xf]  ;;  %v3738_v39 = vld [vmem:[%s6245_s5 + $0x368] sm:$0xf0]  ;;  %v3808_v49 = vld [vmem:[%s6245_s5 + $0x3d0] sm:$0xf] }
 0x10b   : > { %v717_v58 = vpop.f32.mrf.mxu0  ;;  %1791 = vmatpush.bf16.msrb.mxu2 %v3665_v59  ;;  %1809 = vmatpush.bf16.msrb.mxu3 %v3669_v61  ;;  %v4263_v59 = vld [vmem:[%s6245_s5 + $0x214] sm:$0xf]  ;;  %v3538_v61 = vld [vmem:[%s6245_s5 + $0x218] sm:$0xf0]  ;;  %v4305_v38 = vld [vmem:[%s6245_s5 + $0x364] sm:$0xf] }
 0x10c   : > { %4459 = vst [vmem:[#allocation2 + $0x20] sm:$0xff] %v4435_v54   ;;  %v718_v11 = vadd.f32 %v4978_v41, %v717_v58  ;;  %v4282_v54 = vld [vmem:[%s6245_s5 + $0x2a4] sm:$0xf0]  ;;  %v3629_v58 = vor.u32 %v4281_v55, %v3626_v57  ;;  %v3541_v0 = vor.u32 %v4263_v59, %v3538_v61  ;;  %v4320_v50 = vld [vmem:[%s6245_s5 + $0x3d4] sm:$0xf0] }
 0x10d   : > { %v3625_v52 = vor.u32 %v4282_v54, %v3624_v51  ;;  %v4319_v51 = vld [vmem:[%s6245_s5 + $0x3d4] sm:$0xf]  ;;  %v3810_v55 = vld [vmem:[%s6245_s5 + $0x3d8] sm:$0xf0]  ;;  %v3722_v61 = vld [vmem:[%s6245_s5 + $0x348] sm:$0xf0] }
 0x10e   : > { %1654 = vmatpush.bf16.msrb.mxu1 %v3581_v36  ;;  %v739_v24 = vmax.f32 %v718_v11, 0.0  ;;  %v4279_v36 = vld [vmem:[%s6245_s5 + $0x294] sm:$0xf]  ;;  %v3813_v57 = vor.u32 %v4319_v51, %v3810_v55  ;;  %v4309_v51 = vld [vmem:[%s6245_s5 + $0x384] sm:$0xf] }
 0x10f   : > { %1792 = vmatpush.bf16.msrb.mxu2 %v3657_v2  ;;  %1810 = vmatpush.bf16.msrb.mxu3 %v3661_v7  ;;  %v4261_v2 = vld [vmem:[%s6245_s5 + $0x204] sm:$0xf]  ;;  %v3621_v5 = vor.u32 %v4279_v36, %v3618_v62  ;;  %v3530_v7 = vld [vmem:[%s6245_s5 + $0x208] sm:$0xf0] }
 0x110   : > { %2296 = vmatmul.bf16.gmra.mxu0 %v5341_v60  ;;  %v851_v35 = vmul.f32 %v822_v33, %v739_v24  ;;  %v4323_v33 = vld [vmem:[%s6245_s5 + $0x3f4] sm:$0xf]  ;;  %v4317_v62 = vld [vmem:[%s6245_s5 + $0x3c4] sm:$0xf] }
 0x112   : > { %1655 = vmatpush.bf16.msrb.mxu1 %v3573_v12  ;;  %v4277_v12 = vld [vmem:[%s6245_s5 + $0x284] sm:$0xf] }
 0x113   : > { %v719_v21 = vpop.f32.mrf.mxu0  ;;  %1793 = vmatpush.bf16.msrb.mxu2 %v3649_v14  ;;  %1811 = vmatpush.bf16.msrb.mxu3 %v3653_v15  ;;  %v3533_v15 = vor.u32 %v4261_v2, %v3530_v7  ;;  %v3613_v20 = vor.u32 %v4277_v12, %v3610_v4  ;;  %v1375_v54 = vld [vmem:[#allocation2 + $0x20] sm:$0x3]  ;;  %v3801_v7 = vor.u32 %v4318_v6, %v3800_v40  ;;  %v3792_v12 = vld [vmem:[%s6245_s5 + $0x3b0] sm:$0xf]  ;;  %v3906_v40 = vld [vmem:[%s6245_s5 + $0x468] sm:$0xf0] }
 0x114   : > { %v720_v26 = vadd.f32 %v4978_v41, %v719_v21  ;;  %v837_v21 = vpop.permute.xlu0 %836  ;;  %v1398_v59 = vunpack.c.l.b16 %v1375_v54  ;;  %v3770_v54 = vld [vmem:[%s6245_s5 + $0x388] sm:$0xf0] }
 0x116   : > { %v740_v29 = vmax.f32 %v720_v26, 0.0  ;;  %1656 = vmatpush.bf16.msrb.mxu1 %v3565_v27  ;;  %v3746_v26 = vld [vmem:[%s6245_s5 + $0x378] sm:$0xf0]  ;;  %v3824_v27 = vld [vmem:[%s6245_s5 + $0x3f0] sm:$0xf] }
 0x117   : > { %1794 = vmatpush.bf16.msrb.mxu2 %v3641_v28  ;;  %1812 = vmatpush.bf16.msrb.mxu3 %v3645_v32  ;;  %v4324_v32 = vld [vmem:[%s6245_s5 + $0x3f4] sm:$0xf0] }
 0x118   : > { %v852_v37 = vmul.f32 %v827_v34, %v740_v29  ;;  %1211 = vmatmul.bf16.gmra.mxu1 %v5170_v56  ;;  %1344 = vmatmul.bf16.gmra.mxu2 %v5336_v53  ;;  %v4284_v56 = vld [vmem:[%s6245_s5 + $0x2b4] sm:$0xf0]  ;;  %v4283_v53 = vld [vmem:[%s6245_s5 + $0x2b4] sm:$0xf]  ;;  %v3826_v34 = vld [vmem:[%s6245_s5 + $0x3f8] sm:$0xf0] }
 0x119   : > { %v3633_v47 = vor.u32 %v4284_v56, %v3632_v42  ;;  %v3637_v48 = vor.u32 %v4283_v53, %v3634_v45  ;;  %v3816_v42 = vld [vmem:[%s6245_s5 + $0x3e0] sm:$0xf]  ;;  %v4321_v56 = vld [vmem:[%s6245_s5 + $0x3e4] sm:$0xf]  ;;  %v3818_v45 = vld [vmem:[%s6245_s5 + $0x3e8] sm:$0xf0] }
 0x11a   : > { %v4440_v43 = vpack.c.bf16 %v852_v37, %v851_v35  ;;  %1657 = vmatpush.bf16.msrb.mxu1 %v3557_v44  ;;  %v3825_v35 = vor.u32 %v4324_v32, %v3824_v27  ;;  %v3829_v37 = vor.u32 %v4323_v33, %v3826_v34  ;;  %v4322_v44 = vld [vmem:[%s6245_s5 + $0x3e4] sm:$0xf0]  ;;  %v4313_v27 = vld [vmem:[%s6245_s5 + $0x3a4] sm:$0xf]  ;;  %v4295_v33 = vld [vmem:[%s6245_s5 + $0x314] sm:$0xf] }
 0x11b   : > { %v722_v46 = vpop.f32.mrf.mxu0  ;;  %1795 = vmatpush.bf16.msrb.mxu2 %v3633_v47  ;;  %1813 = vmatpush.bf16.msrb.mxu3 %v3637_v48  ;;  %v3817_v53 = vor.u32 %v4322_v44, %v3816_v42  ;;  %v3730_v47 = vld [vmem:[%s6245_s5 + $0x358] sm:$0xf0]  ;;  %v3821_v48 = vor.u32 %v4321_v56, %v3818_v45 }
 0x11c   : > { %4460 = vst [vmem:[#allocation2 + $0x28] sm:$0xff] %v4440_v43   ;;  %v723_v63 = vadd.f32 %v4978_v41, %v722_v46  ;;  %v3741_v43 = vor.u32 %v4305_v38, %v3738_v39  ;;  %v4303_v46 = vld [vmem:[%s6245_s5 + $0x354] sm:$0xf]  ;;  %v3698_v34 = vld [vmem:[%s6245_s5 + $0x318] sm:$0xf0] }
 0x11d   : > { %v4311_v38 = vld [vmem:[%s6245_s5 + $0x394] sm:$0xf]  ;;  %v3778_v39 = vld [vmem:[%s6245_s5 + $0x398] sm:$0xf0] }
 0x11e   : > { %1658 = vmatpush.bf16.msrb.mxu1 %v3549_v31  ;;  %v741_v30 = vmax.f32 %v723_v63, 0.0  ;;  %v3733_v31 = vor.u32 %v4303_v46, %v3730_v47  ;;  %v3802_v63 = vld [vmem:[%s6245_s5 + $0x3c8] sm:$0xf0]  ;;  %v3781_v56 = vor.u32 %v4311_v38, %v3778_v39  ;;  %v4293_v46 = vld [vmem:[%s6245_s5 + $0x304] sm:$0xf] }
 0x11f   : > { %1796 = vmatpush.bf16.msrb.mxu2 %v3625_v52  ;;  %1814 = vmatpush.bf16.msrb.mxu3 %v3629_v58  ;;  %v3809_v52 = vor.u32 %v4320_v50, %v3808_v49  ;;  %v4301_v58 = vld [vmem:[%s6245_s5 + $0x344] sm:$0xf]  ;;  %v3805_v8 = vor.u32 %v4317_v62, %v3802_v63  ;;  %v3690_v47 = vld [vmem:[%s6245_s5 + $0x308] sm:$0xf0]  ;;  %v3898_v62 = vld [vmem:[%s6245_s5 + $0x458] sm:$0xf0] }
 0x120   : > { %v853_v23 = vmul.f32 %v832_v22, %v741_v30  ;;  %v3725_v2 = vor.u32 %v4301_v58, %v3722_v61  ;;  %v4316_v30 = vld [vmem:[%s6245_s5 + $0x3b4] sm:$0xf0]  ;;  %v4297_v22 = vld [vmem:[%s6245_s5 + $0x324] sm:$0xf]  ;;  %v3693_v50 = vor.u32 %v4293_v46, %v3690_v47  ;;  %v4341_v58 = vld [vmem:[%s6245_s5 + $0x474] sm:$0xf] }
 0x121   : > { %v2001_v63 = vld [vmem:[#allocation2 + $0x10] sm:$0xf] }
 0x122   : > { %1659 = vmatpush.bf16.msrb.mxu1 %v3541_v0 }
 0x123   : > { %v724_v10 = vpop.f32.mrf.mxu0  ;;  %v5562_v11 = vld [vmem:[#allocation2 + $0x28] sm:$0xff]  ;;  %1797 = vmatpush.bf16.msrb.mxu2 %v3617_v3  ;;  %1815 = vmatpush.bf16.msrb.mxu3 %v3621_v5  ;;  %v5648_v3 = vpack.c.b16 %v1398_v59, %v1398_v59  ;;  %v3914_v59 = vld [vmem:[%s6245_s5 + $0x478] sm:$0xf0] }
 0x124   : > { %v725_v14 = vadd.f32 %v4978_v41, %v724_v10  ;;  %1643 = vmatmul.bf16.vlgmr.msra.gmra.mxu3 %v5562_v11  ;;  %v4307_v41 = vld [vmem:[%s6245_s5 + $0x374] sm:$0xf]  ;;  %v3714_v10 = vld [vmem:[%s6245_s5 + $0x338] sm:$0xf0]  ;;  %v3917_v61 = vor.u32 %v4341_v58, %v3914_v59 }
 0x125   : > { %v3749_v29 = vor.u32 %v4307_v41, %v3746_v26  ;;  %v3717_v4 = vor.u32 %v4299_v9, %v3714_v10  ;;  %v4314_v26 = vld [vmem:[%s6245_s5 + $0x3a4] sm:$0xf0]  ;;  %v4335_v9 = vld [vmem:[%s6245_s5 + $0x444] sm:$0xf]  ;;  %v3890_v10 = vld [vmem:[%s6245_s5 + $0x448] sm:$0xf0] }
 0x126   : > { %v742_v16 = vmax.f32 %v725_v14, 0.0  ;;  %1660 = vmatpush.bf16.msrb.mxu1 %v3533_v15  ;;  %v4315_v14 = vld [vmem:[%s6245_s5 + $0x3b4] sm:$0xf]  ;;  %v3794_v15 = vld [vmem:[%s6245_s5 + $0x3b8] sm:$0xf0] }
 0x127   : > { %1798 = vmatpush.bf16.msrb.mxu2 %v3609_v19  ;;  %1816 = vmatpush.bf16.msrb.mxu3 %v3613_v20  ;;  %v1702_v19 = vshll.u32 %v5648_v3, 16  ;;  %v3793_v20 = vor.u32 %v4316_v30, %v3792_v12  ;;  %v4467_v30 = vld [vmem:[#allocation2 + $0x18] sm:$0xc] }
 0x128   : > { %v854_v24 = vmul.f32 %v837_v21, %v742_v16  ;;  %1491 = vmatmul.bf16.vlgmr.msra.gmra.mxu1 %v5572_v17  ;;  %1509 = vmatmul.bf16.vlgmr.msra.gmra.mxu2 %v5572_v17  ;;  %v1697_v16 = vshll.u32 %v5572_v17, 16  ;;  %v3797_v21 = vor.u32 %v4315_v14, %v3794_v15  ;;  %v3893_v14 = vor.u32 %v4335_v9, %v3890_v10 }
 0x129   : > { %v1704_v45 = vrot.slane %v1702_v19, 1  ;;  %v3882_v19 = vld [vmem:[%s6245_s5 + $0x438] sm:$0xf0] }
 0x12a   : > { %v4445_v28 = vpack.c.bf16 %v854_v24, %v853_v23  ;;  %1976 = vmatpush.bf16.msra.mxu1 %v3749_v29  ;;  %v3706_v23 = vld [vmem:[%s6245_s5 + $0x328] sm:$0xf0]  ;;  %v3784_v24 = vld [vmem:[%s6245_s5 + $0x3a0] sm:$0xf]  ;;  %v1699_v42 = vrot.slane %v1697_v16, 1 }
 0x12b   : > { %2124 = vmatpush.bf16.msra.mxu2 %v3825_v35  ;;  %2142 = vmatpush.bf16.msra.mxu3 %v3829_v37  ;;  %v3709_v41 = vor.u32 %v4297_v22, %v3706_v23  ;;  %v3785_v29 = vor.u32 %v4314_v26, %v3784_v24  ;;  %v3776_v35 = vld [vmem:[%s6245_s5 + $0x390] sm:$0xf]  ;;  %v4312_v37 = vld [vmem:[%s6245_s5 + $0x394] sm:$0xf0]  ;;  %v4331_v26 = vld [vmem:[%s6245_s5 + $0x424] sm:$0xf] }
 0x12c   : > { %4461 = vst [vmem:[#allocation2 + $0x38] sm:$0xff] %v4445_v28   ;;  %v3786_v28 = vld [vmem:[%s6245_s5 + $0x3a8] sm:$0xf0]  ;;  %v3777_v44 = vor.u32 %v4312_v37, %v3776_v35 }
 0x12d   : > { %v3789_v32 = vor.u32 %v4313_v27, %v3786_v28  ;;  %v3874_v27 = vld [vmem:[%s6245_s5 + $0x428] sm:$0xf0] }
 0x12e   : > { %1977 = vmatpush.bf16.msra.mxu1 %v3741_v43  ;;  %v3701_v43 = vor.u32 %v4295_v33, %v3698_v34  ;;  %v3877_v28 = vor.u32 %v4331_v26, %v3874_v27 }
 0x12f   : > { %2125 = vmatpush.bf16.msra.mxu2 %v3817_v53  ;;  %2143 = vmatpush.bf16.msra.mxu3 %v3821_v48  ;;  %v1695_v53 = vshrl.u32 %v5572_v17, 16  ;;  %v3768_v48 = vld [vmem:[%s6245_s5 + $0x380] sm:$0xf]  ;;  %v4310_v17 = vld [vmem:[%s6245_s5 + $0x384] sm:$0xf0] }
 0x130   : > { %v3769_v55 = vor.u32 %v4310_v17, %v3768_v48 }
 0x131   : > { %v1700_v49 = vor.u32 %v1699_v42, %v1695_v53  ;;  %v4327_v53 = vld [vmem:[%s6245_s5 + $0x404] sm:$0xf] }
 0x132   : > { %1978 = vmatpush.bf16.msra.mxu1 %v3733_v31  ;;  %v3773_v31 = vor.u32 %v4309_v51, %v3770_v54 }
 0x133   : > { %v1527_v36 = vld [vmem:[#allocation2 + $0x38] sm:$0x3]  ;;  %2126 = vmatpush.bf16.msra.mxu2 %v3809_v52  ;;  %2144 = vmatpush.bf16.msra.mxu3 %v3813_v57  ;;  %v1705_v52 = vsel %vm1233_vm2, %v1700_v49, %v1704_v45 }
 0x134   : > { %v1550_v0 = vunpack.c.l.b16 %v1527_v36  ;;  %v4337_v36 = vld [vmem:[%s6245_s5 + $0x454] sm:$0xf] }
 0x136   : > { %v5650_v5 = vpack.c.b16 %v1550_v0, %v1550_v0  ;;  %1979 = vmatpush.bf16.msra.mxu1 %v3725_v2  ;;  %v3901_v0 = vor.u32 %v4337_v36, %v3898_v62 }
 0x137   : > { %2127 = vmatpush.bf16.msra.mxu2 %v3801_v7  ;;  %2145 = vmatpush.bf16.msra.mxu3 %v3805_v8  ;;  %v2022_v7 = vunpack.c.l.b16 %v2001_v63  ;;  %v1706_v8 = vshrl.u32 %v5648_v3, 16 }
 0x138   : > { %1496 = vmatmul.bf16.gmra.mxu1 %v5648_v3  ;;  %1514 = vmatmul.bf16.gmra.mxu2 %v5648_v3  ;;  %v4333_v3 = vld [vmem:[%s6245_s5 + $0x434] sm:$0xf] }
 0x139   : > { %1648 = vmatmul.bf16.gmra.mxu3 %v5650_v5  ;;  %v1708_v12 = vor.u32 %v1706_v8, %v1704_v45  ;;  %v2024_v15 = vpack.c.b16 %v2022_v7, %v2022_v7  ;;  %v3858_v45 = vld [vmem:[%s6245_s5 + $0x408] sm:$0xf0] }
 0x13a   : > { %1980 = vmatpush.bf16.msra.mxu1 %v3717_v4  ;;  %v4466_v4 = vld [vmem:[#allocation2 + $0x18] sm:$0xf0]  ;;  %v3861_v46 = vor.u32 %v4327_v53, %v3858_v45 }
 0x13b   : > { %2128 = vmatpush.bf16.msra.mxu2 %v3793_v20  ;;  %2146 = vmatpush.bf16.msra.mxu3 %v3797_v21  ;;  %v4468_v16 = vor.u32 %v4467_v30, %v4466_v4  ;;  %v3885_v20 = vor.u32 %v4333_v3, %v3882_v19  ;;  %v2034_v22 = vshrl.u32 %v2024_v15, 16  ;;  %v2037_v23 = vshll.u32 %v2024_v15, 16 }
 0x13d   : > { %v2036_v33 = vrot.slane %v2034_v22, 2  ;;  %v2039_v34 = vrot.slane %v2037_v23, 3 }
 0x13e   : > { %1981 = vmatpush.bf16.msra.mxu1 %v3709_v41  ;;  %v2026_v41 = vshrl.u32 %v4468_v16, 16 }
 0x13f   : > { %2129 = vmatpush.bf16.msra.mxu2 %v3785_v29  ;;  %2147 = vmatpush.bf16.msra.mxu3 %v3789_v32  ;;  %v5732_v57 = vpop.f32.mrf.mxu3  ;;  %v4329_v29 = vld [vmem:[%s6245_s5 + $0x414] sm:$0xf]  ;;  %v3866_v32 = vld [vmem:[%s6245_s5 + $0x418] sm:$0xf0] }
 0x140   : > { %v2028_v35 = vrot.slane %v2026_v41, 2  ;;  %v3869_v38 = vor.u32 %v4329_v29, %v3866_v32 }
 0x142   : > { %1982 = vmatpush.bf16.msra.mxu1 %v3701_v43  ;;  %v2040_v43 = vor.u32 %v2039_v34, %v2036_v33 }
 0x143   : > { %2130 = vmatpush.bf16.msra.mxu2 %v3777_v44  ;;  %2148 = vmatpush.bf16.msra.mxu3 %v3781_v56 }
 0x146   : > { %1983 = vmatpush.bf16.msra.mxu1 %v3693_v50 }
 0x147   : > { %2131 = vmatpush.bf16.msra.mxu2 %v3769_v55  ;;  %2149 = vmatpush.bf16.msra.mxu3 %v3773_v31  ;;  %v5752_v2 = vpop.f32.mrf.mxu3 }
 0x148   : > { %1661 = vmatmul.bf16.vlgmr.msrb.gmra.mxu1 %v5562_v11  ;;  %1799 = vmatmul.bf16.vlgmr.msrb.gmra.mxu2 %v1705_v52  ;;  %v4339_v11 = vld [vmem:[%s6245_s5 + $0x464] sm:$0xf] }
 0x149   : > { %1817 = vmatmul.bf16.vlgmr.msrb.gmra.mxu3 %v1705_v52  ;;  %v3909_v6 = vor.u32 %v4339_v11, %v3906_v40 }
 0x14a   : > { %2301 = vmatpush.bf16.msrb.mxu1 %v3917_v61 }
 0x14e   : > { %2302 = vmatpush.bf16.msrb.mxu1 %v3909_v6 }
 0x152   : > { %2303 = vmatpush.bf16.msrb.mxu1 %v3901_v0 }
 0x156   : > { %2304 = vmatpush.bf16.msrb.mxu1 %v3893_v14 }
 0x158   : > { %1666 = vmatmul.bf16.gmra.mxu1 %v5650_v5  ;;  %1804 = vmatmul.bf16.gmra.mxu2 %v1708_v12  ;;  %v2029_v5 = vshll.u32 %v4468_v16, 16 }
 0x159   : > { %1822 = vmatmul.bf16.gmra.mxu3 %v1708_v12  ;;  %v1063_v39 = vpop.f32.mrf.mxu1 }
 0x15a   : > { %2305 = vmatpush.bf16.msrb.mxu1 %v3885_v20  ;;  %v2031_v37 = vrot.slane %v2029_v5, 3  ;;  %v1190_v0 = vadd.f32 %v5732_v57, %v1063_v39 }
 0x15b   : > { %v1194_v21 = vpop.f32.mrf.mxu3 }
 0x15c   : > { %v2032_v56 = vor.u32 %v2031_v37, %v2028_v35 }
 0x15d   : > { %v5768_v24 = vpop.f32.mrf.mxu0 }
 0x15e   : > { %2306 = vmatpush.bf16.msrb.mxu1 %v3877_v28  ;;  %v2041_v47 = vsel %vm1858_vm1, %v2032_v56, %v2040_v43 }
 0x15f   : > { %v1081_v48 = vpop.f32.mrf.mxu2 }
 0x161   : > { %v1065_v17 = vpop.f32.mrf.mxu1 }
 0x162   : > { %2307 = vmatpush.bf16.msrb.mxu1 %v3869_v38  ;;  %v1192_v4 = vadd.f32 %v5752_v2, %v1065_v17 }
 0x163   : > { %v1196_v42 = vpop.f32.mrf.mxu3 }
 0x165   : > { %v5782_v44 = vpop.f32.mrf.mxu0 }
 0x166   : > { %2308 = vmatpush.bf16.msrb.mxu1 %v3861_v46 }
 0x167   : > { %v1083_v51 = vpop.f32.mrf.mxu2 }
 0x168   : > { %1984 = vmatmul.bf16.vlgmr.msra.gmra.mxu1 %v5216_v25  ;;  %2132 = vmatmul.bf16.vlgmr.msra.gmra.mxu2 %v2041_v47 }
 0x169   : > { %2150 = vmatmul.bf16.vlgmr.msra.gmra.mxu3 %v2041_v47 }
 0x16b   : > { %v1358_v49 = vpop.f32.mrf.mxu3 }
 0x16d   : > { %v5792_v50 = vpop.f32.mrf.mxu0 }
 0x173   : > { %v1360_v54 = vpop.f32.mrf.mxu3 }
 0x175   : > { %v1974_v55 = vpop.f32.mrf.mxu0  ;;  %v1068_v31 = vpop.f32.mrf.mxu1 }
 0x176   : > { %v1195_v52 = vadd.f32 %v1194_v21, %v1068_v31 }
 0x178   : > { %1989 = vmatmul.bf16.gmra.mxu1 %v5205_v18  ;;  %2137 = vmatmul.bf16.gmra.mxu2 %v2040_v43 }
 0x179   : > { %2155 = vmatmul.bf16.gmra.mxu3 %v2040_v43  ;;  %v887_v43 = vlaneseq }
 0x17b   : > { %v1086_v58 = vpop.f32.mrf.mxu2  ;;  %v5809_v46 = vand.u32 127, %v887_v43 }
 0x17c   : > { %v1363_v59 = vpop.f32.mrf.mxu3 }
 0x17d   : > { %v5795_v25 = vpop.f32.mrf.mxu0  ;;  %v1070_v61 = vpop.f32.mrf.mxu1  ;;  %v893_v55 = vshrl.u32 %v5809_v46, 16  ;;  %vm3020_vm14 = vcmp.lt.s32.totalorder %v5809_v46, 5 }
 0x183   : > { %v1088_v11 = vpop.f32.mrf.mxu2 }
 0x184   : > { %v1365_v40 = vpop.f32.mrf.mxu3 }
 0x185   : > { %v5797_v6 = vpop.f32.mrf.mxu0  ;;  %v1207_v36 = vpop.f32.mrf.mxu1 }
 0x186   : > { %v1208_v62 = vadd.f32 %v1207_v36, %v1081_v48  ;;  %v892_v48 = vand.u32 65535, %v5809_v46 }
 0x188   : > { %2309 = vmatmul.bf16.vlgmr.msrb.gmra.mxu1 %v5372_v13  ;;  %v1368_v63 = vadd.f32 %v1358_v49, %v1208_v62  ;;  %v896_v31 = vmul.u32 52428, %v892_v48 }
 0x18a   : > { %v899_v61 = vshll.u32 %v896_v31, 16 }
 0x18b   : > { %v1340_v7 = vpop.f32.mrf.mxu2 }
 0x18c   : > { %v1367_v18 = vadd.f32 %v1340_v7, %v1190_v0 }
 0x18d   : > { %v5801_v8 = vpop.f32.mrf.mxu0  ;;  %v1209_v9 = vpop.f32.mrf.mxu1 }
 0x18e   : > { %v1210_v10 = vadd.f32 %v1209_v9, %v1083_v51 }
 0x190   : > { %v1370_v12 = vadd.f32 %v1360_v54, %v1210_v10 }
 0x193   : > { %v1342_v30 = vpop.f32.mrf.mxu2 }
 0x194   : > { %v1369_v14 = vadd.f32 %v1342_v30, %v1192_v4  ;;  %v900_v4 = vshrl.u32 %v896_v31, 16  ;;  %v4358_v31 = vld [vmem:[%s6247_s7 + $0x74] sm:$0xf0] }
 0x195   : > { %v2299_v15 = vpop.f32.mrf.mxu0  ;;  %v1212_v16 = vpop.f32.mrf.mxu1 }
 0x196   : > { %v1213_v3 = vadd.f32 %v1212_v16, %v1086_v58  ;;  %v895_v58 = vmul.u32 52429, %v892_v48 }
 0x198   : > { %2314 = vmatmul.bf16.gmra.mxu1 %v5341_v60  ;;  %v1372_v13 = vadd.f32 %v1363_v59, %v1213_v3  ;;  %v897_v59 = vmul.u32 52429, %v893_v55  ;;  %vm903_vm4 = vc.u32 %v895_v58, %v899_v61  ;;  %v905_v62 = vadd.s32 %v899_v61, %v895_v58 }
 0x199   : > { %v904_v0 = vsel %vm903_vm4, 1, %v4594_v1 }
 0x19a   : > { %v901_v36 = vshll.u32 %v897_v59, 16  ;;  %v902_v3 = vshrl.u32 %v897_v59, 16  ;;  %v4356_v59 = vld [vmem:[%s6247_s7 + $0x64] sm:$0xf0] }
 0x19b   : > { %v1345_v19 = vpop.f32.mrf.mxu2 }
 0x19c   : > { %v5805_v20 = vadd.f32 %v1345_v19, %v1195_v52  ;;  %vm907_vm5 = vc.u32 %v905_v62, %v901_v36 }
 0x19d   : > { %v1214_v57 = vpop.f32.mrf.mxu1 }
 0x1a3   : > { %v1347_v21 = vpop.f32.mrf.mxu2 }
 0x1a5   : > { %v1492_v22 = vpop.f32.mrf.mxu1 }
 0x1a6   : > { %v1519_v23 = vadd.f32 %v1492_v22, %v1367_v18 }
 0x1a7   : > { %v1644_v41 = vpop.f32.mrf.mxu3 }
 0x1a8   : > { %v1671_v5 = vadd.f32 %v1644_v41, %v1519_v23 }
 0x1ab   : > { %v1510_v26 = vpop.f32.mrf.mxu2 }
 0x1ac   : > { %v1520_v27 = vadd.f32 %v1510_v26, %v1368_v63  ;;  %v898_v63 = vmul.u32 52428, %v893_v55  ;;  %v3980_v55 = vld [vmem:[%s6247_s7 + $0x70] sm:$0xf] }
 0x1ad   : > { %v1494_v2 = vpop.f32.mrf.mxu1  ;;  %v3981_v58 = vor.u32 %v4358_v31, %v3980_v55  ;;  %v4046_v55 = vld [vmem:[%s6247_s7 + $0xf8] sm:$0xf0] }
 0x1ae   : > { %v1521_v28 = vadd.f32 %v1494_v2, %v1369_v14  ;;  %v906_v10 = vadd.s32 %v904_v0, %v898_v63  ;;  %v4357_v0 = vld [vmem:[%s6247_s7 + $0x74] sm:$0xf] }
 0x1af   : > { %v1646_v29 = vpop.f32.mrf.mxu3  ;;  %2595 = vmatpush.bf16.msrb.mxu0 %v3981_v58  ;;  %v3958_v58 = vld [vmem:[%s6247_s7 + $0x48] sm:$0xf0] }
 0x1b0   : > { %v1673_v32 = vadd.f32 %v1646_v29, %v1521_v28 }
 0x1b3   : > { %v1512_v33 = vpop.f32.mrf.mxu2 }
 0x1b4   : > { %v1522_v34 = vadd.f32 %v1512_v33, %v1370_v12  ;;  %v908_v12 = vsel %vm907_vm5, 1, %v4594_v1 }
 0x1b5   : > { %v1497_v35 = vpop.f32.mrf.mxu1  ;;  %v910_v30 = vadd.s32 %v908_v12, %v906_v10  ;;  %v4354_v10 = vld [vmem:[%s6247_s7 + $0x54] sm:$0xf0]  ;;  %v3982_v12 = vld [vmem:[%s6247_s7 + $0x78] sm:$0xf0] }
 0x1b6   : > { %v1523_v41 = vadd.f32 %v1497_v35, %v5805_v20 }
 0x1bb   : > { %v1515_v60 = vpop.f32.mrf.mxu2 }
 0x1bc   : > { %v5807_v37 = vadd.f32 %v1515_v60, %v1372_v13  ;;  %v1649_v38 = vpop.f32.mrf.mxu3  ;;  %v911_v13 = vadd.s32 %v910_v30, %v900_v4  ;;  %v4595_v30 = vmov 0.0  }
 0x1bd   : > { %v1499_v39 = vpop.f32.mrf.mxu1  ;;  %v1675_v2 = vadd.f32 %v1649_v38, %v1523_v41 }
 0x1be   : > { %v912_v19 = vadd.s32 %v911_v13, %v902_v3  ;;  %v4355_v3 = vld [vmem:[%s6247_s7 + $0x64] sm:$0xf]  ;;  %v3974_v13 = vld [vmem:[%s6247_s7 + $0x68] sm:$0xf0] }
 0x1c0   : > { %v913_v23 = vshrl.u32 %v912_v19, 2  ;;  %v4044_v19 = vld [vmem:[%s6247_s7 + $0xf0] sm:$0xf] }
 0x1c3   : > { %v1517_v42 = vpop.f32.mrf.mxu2 }
 0x1c4   : > { %v1651_v56 = vpop.f32.mrf.mxu3 }
 0x1c5   : > { %v1662_v53 = vpop.f32.mrf.mxu1 }
 0x1c6   : > { %v1672_v45 = vadd.f32 %v1662_v53, %v1520_v27  ;;  %v914_v27 = vmul.u32 5, %v913_v23 }
 0x1c8   : > { %v915_v39 = vsub.s32 %v5809_v46, %v914_v27  ;;  %v4352_v27 = vld [vmem:[%s6247_s7 + $0x44] sm:$0xf0] }
 0x1ca   : > { %vm918_vm6 = vcmp.ne.s32.totalorder %v915_v39, 0  ;;  %vm919_vm7 = vcmp.lt.s32.totalorder %v915_v39, 0  ;;  %v921_v53 = vadd.s32 5, %v915_v39 }
 0x1cb   : > { %v1800_v47 = vpop.f32.mrf.mxu2  ;;  %vm5848_vm8 = vmand %vm919_vm7, %vm918_vm6 }
 0x1cc   : > { %v1818_v49 = vpop.f32.mrf.mxu3  ;;  %v1827_v28 = vadd.f32 %v1800_v47, %v1671_v5  ;;  %v5843_v5 = vld [vmem:[%s6246_s6] sm:$0x3] }
 0x1cd   : > { %v5812_v17 = vadd.f32 %v1818_v49, %v1672_v45  ;;  %v1664_v51 = vpop.f32.mrf.mxu1  ;;  %v2327_v48 = vperm.slane %v5843_v5, 0 }
 0x1ce   : > { %v5814_v54 = vadd.f32 %v1664_v51, %v1522_v34  ;;  %v1994_v42 = vadd.f32 %v5768_v24, %v1827_v28  ;;  %v3966_v28 = vld [vmem:[%s6247_s7 + $0x58] sm:$0xf0] }
 0x1d3   : > { %v1802_v52 = vpop.f32.mrf.mxu2 }
 0x1d4   : > { %v5817_v11 = vpop.f32.mrf.mxu3  ;;  %v1829_v26 = vadd.f32 %v1802_v52, %v1673_v32 }
 0x1d5   : > { %v5819_v40 = vpop.f32.mrf.mxu1 }
 0x1d6   : > { %v1996_v60 = vadd.f32 %v5782_v44, %v1829_v26  ;;  %v3956_v26 = vld [vmem:[%s6247_s7 + $0x40] sm:$0xf] }
 0x1db   : > { %v1805_v7 = vpop.f32.mrf.mxu2 }
 0x1dc   : > { %v5822_v18 = vpop.f32.mrf.mxu3  ;;  %v1831_v34 = vadd.f32 %v1805_v7, %v1675_v2  ;;  %v4353_v2 = vld [vmem:[%s6247_s7 + $0x54] sm:$0xf] }
 0x1dd   : > { %v1669_v9 = vpop.f32.mrf.mxu1 }
 0x1de   : > { %v1998_v20 = vadd.f32 %v5792_v50, %v1831_v34  ;;  %v3964_v9 = vld [vmem:[%s6247_s7 + $0x50] sm:$0xf]  ;;  %v3957_v34 = vor.u32 %v4352_v27, %v3956_v26  ;;  %v3926_v26 = vld [vmem:[%s6247_s7 + $0x8] sm:$0xf0] }
 0x1df   : > { %v3965_v23 = vor.u32 %v4354_v10, %v3964_v9  ;;  %v4345_v9 = vld [vmem:[%s6247_s7 + $0x14] sm:$0xf]  ;;  %v3934_v10 = vld [vmem:[%s6247_s7 + $0x18] sm:$0xf0]  ;;  %v4028_v27 = vld [vmem:[%s6247_s7 + $0xd0] sm:$0xf] }
 0x1e3   : > { %v1807_v14 = vpop.f32.mrf.mxu2 }
 0x1e4   : > { %v1825_v15 = vpop.f32.mrf.mxu3 }
 0x1e5   : > { %v5825_v16 = vpop.f32.mrf.mxu1  ;;  %v3985_v15 = vor.u32 %v4357_v0, %v3982_v12  ;;  %v3942_v0 = vld [vmem:[%s6247_s7 + $0x28] sm:$0xf0]  ;;  %v3937_v12 = vor.u32 %v4345_v9, %v3934_v10  ;;  %v4382_v10 = vld [vmem:[%s6251_s11 + $0x38] sm:$0xff] }
 0x1eb   : > { %v2133_v57 = vpop.f32.mrf.mxu2 }
 0x1ec   : > { %v5827_v21 = vpop.f32.mrf.mxu3  ;;  %v2160_v56 = vadd.f32 %v2133_v57, %v1994_v42  ;;  %v4374_v57 = vld [vmem:[%s6247_s7 + $0xf4] sm:$0xf0] }
 0x1ed   : > { %v5829_v22 = vpop.f32.mrf.mxu1  ;;  %v4045_v41 = vor.u32 %v4374_v57, %v4044_v19  ;;  %v4350_v42 = vld [vmem:[%s6247_s7 + $0x34] sm:$0xf0]  ;;  %v4038_v19 = vld [vmem:[%s6247_s7 + $0xe8] sm:$0xf0] }
 0x1ee   : > { %v2319_v50 = vadd.f32 %v5795_v25, %v2160_v56  ;;  %v3972_v25 = vld [vmem:[%s6247_s7 + $0x60] sm:$0xf]  ;;  %v1676_v56 = vadd.f32 %v5819_v40, %v5807_v37 }
 0x1ef   : > { %v3973_v63 = vor.u32 %v4356_v59, %v3972_v25  ;;  %2608 = vmatpush.bf16.msra.mxu1 %v4045_v41  ;;  %v4343_v41 = vld [vmem:[%s6247_s7 + $0x4] sm:$0xf] }
 0x1f0   : > { %v2331_v52 = vadd.f32 %v2327_v48, %v2319_v50 }
 0x1f1   : > { %2596 = vmatpush.bf16.msrb.mxu0 %v3973_v63  ;;  %v4347_v63 = vld [vmem:[%s6247_s7 + $0x24] sm:$0xf] }
 0x1f2   : > { %v2337_v4 = vmax.f32 %v2331_v52, 0.0  ;;  %v4351_v52 = vld [vmem:[%s6247_s7 + $0x44] sm:$0xf] }
 0x1f3   : > { %v2135_v1 = vpop.f32.mrf.mxu2  ;;  %v3961_v59 = vor.u32 %v4351_v52, %v3958_v58 }
 0x1f4   : > { %v5832_v29 = vpop.f32.mrf.mxu3  ;;  %v2162_v43 = vadd.f32 %v2135_v1, %v1996_v60  ;;  %v3977_v1 = vor.u32 %v4355_v3, %v3974_v13  ;;  %v4372_v3 = vld [vmem:[%s6247_s7 + $0xe4] sm:$0xf0]  ;;  %v4371_v13 = vld [vmem:[%s6247_s7 + $0xe4] sm:$0xf] }
 0x1f5   : > { %v5834_v33 = vpop.f32.mrf.mxu1  ;;  %2597 = vmatpush.bf16.msrb.mxu0 %v3965_v23  ;;  %v4041_v23 = vor.u32 %v4371_v13, %v4038_v19  ;;  %v4388_v13 = vld [vmem:[%s6251_s11 + $0x68] sm:$0xff]  ;;  %v4377_v19 = vld [vmem:[%s6251_s11 + $0x10] sm:$0xff] }
 0x1f6   : > { %v2321_v35 = vadd.f32 %v5797_v6, %v2162_v43  ;;  %v922_v6 = vsel %vm5848_vm8, %v921_v53, %v915_v39  ;;  %v3948_v39 = vld [vmem:[%s6247_s7 + $0x30] sm:$0xf]  ;;  %v1830_v43 = vadd.f32 %v5817_v11, %v5814_v54  ;;  %v3940_v53 = vld [vmem:[%s6247_s7 + $0x20] sm:$0xf]  ;;  %v1995_v54 = vadd.f32 %v5825_v16, %v5812_v17  ;;  %v4346_v17 = vld [vmem:[%s6247_s7 + $0x14] sm:$0xf0] }
 0x1f7   : > { %vm923_vm10 = vcmp.lt.s32.totalorder %v922_v6, 4  ;;  %v4373_v6 = vld [vmem:[%s6247_s7 + $0xf4] sm:$0xf] }
 0x1f8   : > { %v2333_v51 = vadd.f32 %v2327_v48, %v2321_v35  ;;  %v5882_v14 = vsel %vm923_vm10, 0.0625, %v4595_v30  ;;  %v1997_v35 = vadd.f32 %v5829_v22, %v1830_v43  ;;  %v2161_v40 = vadd.f32 %v5827_v21, %v1995_v54  ;;  %v4344_v30 = vld [vmem:[%s6247_s7 + $0x4] sm:$0xf0] }
 0x1f9   : > { %2598 = vmatpush.bf16.msrb.mxu0 %v3957_v34  ;;  %v4368_v43 = vld [vmem:[%s6247_s7 + $0xc4] sm:$0xf0] }
 0x1fa   : > { %v2339_v62 = vmax.f32 %v2333_v51, 0.0  ;;  %v2163_v37 = vadd.f32 %v5832_v29, %v1997_v35  ;;  %v2328_v29 = vperm.slane %v5843_v5, 1 }
 0x1fb   : > { %v2138_v32 = vpop.f32.mrf.mxu2 }
 0x1fc   : > { %v2164_v38 = vadd.f32 %v2138_v32, %v1998_v20  ;;  %v5846_v44 = vpop.f32.mrf.mxu3  ;;  %v3969_v20 = vor.u32 %v4353_v2, %v3966_v28  ;;  %v1832_v32 = vadd.f32 %v5822_v18, %v1676_v56  ;;  %v4369_v2 = vld [vmem:[%s6247_s7 + $0xd4] sm:$0xf]  ;;  %v3929_v28 = vor.u32 %v4343_v41, %v3926_v26  ;;  %v4367_v56 = vld [vmem:[%s6247_s7 + $0xc4] sm:$0xf]  ;;  %v4376_v41 = vld [vmem:[%s6251_s11 + $0x8] sm:$0xff] }
 0x1fd   : > { %v1992_v45 = vpop.f32.mrf.mxu1  ;;  %v4386_v26 = vld [vmem:[%s6251_s11 + $0x58] sm:$0xff] }
 0x1fe   : > { %v2323_v47 = vadd.f32 %v5801_v8, %v2164_v38  ;;  %v3949_v38 = vor.u32 %v4350_v42, %v3948_v39  ;;  %v4348_v45 = vld [vmem:[%s6247_s7 + $0x24] sm:$0xf0]  ;;  %v1999_v11 = vadd.f32 %v5834_v33, %v1832_v32  ;;  %v4020_v39 = vld [vmem:[%s6247_s7 + $0xc0] sm:$0xf] }
 0x1ff   : > { %v3941_v24 = vor.u32 %v4348_v45, %v3940_v53  ;;  %v2650_v32 = vld [vmem:[%s6249_s9] sm:$0xff]  ;;  %v4021_v35 = vor.u32 %v4368_v43, %v4020_v39  ;;  %v4012_v53 = vld [vmem:[%s6247_s7 + $0xb0] sm:$0xf]  ;;  %v4366_v45 = vld [vmem:[%s6247_s7 + $0xb4] sm:$0xf0] }
 0x200   : > { %v2335_v49 = vadd.f32 %v2327_v48, %v2323_v47  ;;  %v2165_v18 = vadd.f32 %v5846_v44, %v1999_v11  ;;  %2599 = vmatpush.bf16.msrb.mxu0 %v3949_v38  ;;  %v3932_v47 = vld [vmem:[%s6247_s7 + $0x10] sm:$0xf]  ;;  %v2653_v54 = vunpack.c.l.b16 %v2650_v32  ;;  %v4014_v11 = vld [vmem:[%s6247_s7 + $0xb8] sm:$0xf0]  ;;  %v2654_v58 = vunpack.c.h.b16 %v2650_v32  ;;  %v2651_v43 = vld [vmem:[%s6250_s10] sm:$0x3] }
 0x201   : > { %v3933_v44 = vor.u32 %v4346_v17, %v3932_v47  ;;  %v4364_v47 = vld [vmem:[%s6247_s7 + $0xa4] sm:$0xf0]  ;;  %v4363_v17 = vld [vmem:[%s6247_s7 + $0xa4] sm:$0xf]  ;;  %v4397_v32 = vld [vmem:[%s6253_s13 + $0x30] sm:$0xff] }
 0x202   : > { %v2341_v8 = vmax.f32 %v2335_v49, 0.0 }
 0x203   : > { %v2140_v61 = vpop.f32.mrf.mxu2 }
 0x204   : > { %v2158_v36 = vpop.f32.mrf.mxu3  ;;  %3918 = vmatpush.msk.msrb.mxu2 %vm2347_vm9, %v2341_v8  ;;  %2600 = vmatpush.bf16.msrb.mxu0 %v3941_v24  ;;  %v4049_v8 = vor.u32 %v4373_v6, %v4046_v55  ;;  %v4349_v61 = vld [vmem:[%s6247_s7 + $0x34] sm:$0xf]  ;;  %v4004_v24 = vld [vmem:[%s6247_s7 + $0xa0] sm:$0xf] }
 0x205   : > { %v2310_v7 = vpop.f32.mrf.mxu1  ;;  %v3950_v36 = vld [vmem:[%s6247_s7 + $0x38] sm:$0xf0]  ;;  %v3988_v55 = vld [vmem:[%s6247_s7 + $0x80] sm:$0xf] }
 0x206   : > { %2368 = vmatpush.msrb.mxu2 %v2339_v62  ;;  %v2320_v16 = vadd.f32 %v2310_v7, %v2161_v40  ;;  %v3953_v62 = vor.u32 %v4349_v61, %v3950_v36  ;;  %v3945_v7 = vor.u32 %v4347_v63, %v3942_v0  ;;  %v2655_v40 = vpack.c.b16 %v2653_v54, %v2653_v54  ;;  %v2394_v63 = vld [vmem:[%s559_s0] sm:$0x1]  ;;  %s3060_s0 = scalar_lea.sflag [#allocation4], %s550_s26 }
 0x207   : > { %v2649_v0 = vpack.c.bf16 %v2394_v63, %v2394_v63  ;;  %v4404_v63 = vld [vmem:[%s6255_s15 + $0x28] sm:$0xff] }
 0x208   : > { %2369 = vmatpush.msrb.mxu2 %v2337_v4  ;;  %v2332_v49 = vadd.f32 %v2328_v29, %v2320_v16  ;;  %2601 = vmatpush.bf16.msrb.mxu0 %v3933_v44  ;;  %v3924_v4 = vld [vmem:[%s6247_s7] sm:$0xf]  ;;  %v4006_v16 = vld [vmem:[%s6247_s7 + $0xa8] sm:$0xf0]  ;;  %v4361_v44 = vld [vmem:[%s6247_s7 + $0x94] sm:$0xf] }
 0x209   : > { %3919 = vmatmul.msk.f32.vlgmr.msrb.gmra.mxu2 %vm2343_vm11, %v5882_v14 }
 0x20a   : > { %2621 = vmatpush.bf16.msra.mxu2 %v3985_v15  ;;  %v2338_v25 = vmax.f32 %v2332_v49, 0.0  ;;  %v3925_v15 = vor.u32 %v4344_v30, %v3924_v4  ;;  %v4390_v4 = vld [vmem:[%s6251_s11 + $0x78] sm:$0xff]  ;;  %v4380_v30 = vld [vmem:[%s6251_s11 + $0x28] sm:$0xff] }
 0x20c   : > { %2602 = vmatpush.bf16.msrb.mxu0 %v3925_v15  ;;  %v4389_v15 = vld [vmem:[%s6251_s11 + $0x70] sm:$0xff] }
 0x20d   : > { %v2312_v60 = vpop.f32.mrf.mxu1 }
 0x20e   : > { %2622 = vmatpush.bf16.msra.mxu2 %v3977_v1  ;;  %v2322_v22 = vadd.f32 %v2312_v60, %v2163_v37  ;;  %v4370_v1 = vld [vmem:[%s6247_s7 + $0xd4] sm:$0xf0]  ;;  %v4030_v60 = vld [vmem:[%s6247_s7 + $0xd8] sm:$0xf0]  ;;  %v4365_v37 = vld [vmem:[%s6247_s7 + $0xb4] sm:$0xf] }
 0x20f   : > { %v4029_v34 = vor.u32 %v4370_v1, %v4028_v27  ;;  %v4033_v42 = vor.u32 %v4369_v2, %v4030_v60  ;;  %v4375_v27 = vld [vmem:[%s6251_s11] sm:$0xff]  ;;  %v4385_v1 = vld [vmem:[%s6251_s11 + $0x50] sm:$0xff] }
 0x210   : > { %v2334_v48 = vadd.f32 %v2328_v29, %v2322_v22  ;;  %v4017_v22 = vor.u32 %v4365_v37, %v4014_v11  ;;  %v4383_v60 = vld [vmem:[%s6251_s11 + $0x40] sm:$0xff] }
 0x212   : > { %2623 = vmatpush.bf16.msra.mxu2 %v3969_v20  ;;  %v2340_v31 = vmax.f32 %v2334_v48, 0.0  ;;  %v4022_v20 = vld [vmem:[%s6247_s7 + $0xc8] sm:$0xf0]  ;;  %v3996_v48 = vld [vmem:[%s6247_s7 + $0x90] sm:$0xf] }
 0x213   : > { %v4025_v38 = vor.u32 %v4367_v56, %v4022_v20  ;;  %v2429_v56 = vld [vmem:[%s6248_s8] sm:$0x3] }
 0x215   : > { %v2315_v50 = vpop.f32.mrf.mxu1 }
 0x216   : > { %v2324_v33 = vadd.f32 %v2315_v50, %v2165_v18  ;;  %2624 = vmatpush.bf16.msra.mxu2 %v3961_v59  ;;  %v4013_v18 = vor.u32 %v4366_v45, %v4012_v53  ;;  %v2668_v50 = vsel %vm2666_vm12, %v2655_v40, 0  ;;  %v2656_v59 = vpack.c.b16 %v2654_v58, %v2654_v58  ;;  %v4392_v58 = vld [vmem:[%s6253_s13 + $0x8] sm:$0xff] }
 0x217   : > { %2680 = vmatpush.bf16.msra.mxu0 %v2668_v50  ;;  %v2592_v40 = vperm.slane %v2429_v56, 1 }
 0x218   : > { %v2336_v21 = vadd.f32 %v2328_v29, %v2324_v33  ;;  %v4005_v29 = vor.u32 %v4364_v47, %v4004_v24  ;;  %v4009_v33 = vor.u32 %v4363_v17, %v4006_v16 }
 0x21a   : > { %v2342_v51 = vmax.f32 %v2336_v21, 0.0  ;;  %2625 = vmatpush.bf16.msra.mxu2 %v3953_v62  ;;  %v4362_v21 = vld [vmem:[%s6247_s7 + $0x94] sm:$0xf0]  ;;  %v2671_v62 = vsel %vm2666_vm12, %v2656_v59, 0  ;;  %v4391_v59 = vld [vmem:[%s6253_s13] sm:$0xff] }
 0x21b   : > { %v3997_v49 = vor.u32 %v4362_v21, %v3996_v48 }
 0x21c   : > { %3920 = vmatpush.msk.msrb.mxu3 %vm2347_vm9, %v2342_v51  ;;  %v3998_v51 = vld [vmem:[%s6247_s7 + $0x98] sm:$0xf0] }
 0x21d   : > { %v2317_v5 = vpop.f32.mrf.mxu1  ;;  %v4001_v6 = vor.u32 %v4361_v44, %v3998_v51 }
 0x21e   : > { %2388 = vmatpush.msrb.mxu3 %v2340_v31  ;;  %2626 = vmatpush.bf16.msra.mxu2 %v3945_v7  ;;  %v4360_v31 = vld [vmem:[%s6247_s7 + $0x84] sm:$0xf0]  ;;  %v4359_v5 = vld [vmem:[%s6247_s7 + $0x84] sm:$0xf] }
 0x220   : > { %2389 = vmatpush.msrb.mxu3 %v2338_v25  ;;  %v3989_v25 = vor.u32 %v4360_v31, %v3988_v55 }
 0x221   : > { %3921 = vmatmul.msk.f32.vlgmr.msrb.gmra.mxu3 %vm2343_vm11, %v5882_v14  ;;  %v4036_v14 = vld [vmem:[%s6247_s7 + $0xe0] sm:$0xf] }
 0x222   : > { %2634 = vmatpush.bf16.msra.mxu3 %v4049_v8  ;;  %2627 = vmatpush.bf16.msra.mxu2 %v3937_v12  ;;  %v4037_v57 = vor.u32 %v4372_v3, %v4036_v14  ;;  %v3990_v8 = vld [vmem:[%s6247_s7 + $0x88] sm:$0xf0]  ;;  %v4381_v12 = vld [vmem:[%s6251_s11 + $0x30] sm:$0xff]  ;;  %v4379_v14 = vld [vmem:[%s6251_s11 + $0x20] sm:$0xff] }
 0x223   : > { %v3993_v52 = vor.u32 %v4359_v5, %v3990_v8  ;;  %v4378_v3 = vld [vmem:[%s6251_s11 + $0x18] sm:$0xff]  ;;  %v4396_v5 = vld [vmem:[%s6253_s13 + $0x28] sm:$0xff] }
 0x224   : > { %2609 = vmatpush.bf16.msra.mxu1 %v4037_v57  ;;  %v4387_v57 = vld [vmem:[%s6251_s11 + $0x60] sm:$0xff]  ;;  %v4394_v8 = vld [vmem:[%s6253_s13 + $0x18] sm:$0xff] }
 0x226   : > { %2635 = vmatpush.bf16.msra.mxu3 %v4041_v23  ;;  %2628 = vmatpush.bf16.msra.mxu2 %v3929_v28 }
 0x228   : > { %2610 = vmatpush.bf16.msra.mxu1 %v4029_v34  ;;  %v4384_v34 = vld [vmem:[%s6251_s11 + $0x48] sm:$0xff] }
 0x22a   : > { %2636 = vmatpush.bf16.msra.mxu3 %v4033_v42  ;;  %2847 = vmatpush.bf16.msrb.mxu2 %v4390_v4  ;;  %v4398_v42 = vld [vmem:[%s6253_s13 + $0x38] sm:$0xff] }
 0x22c   : > { %2611 = vmatpush.bf16.msra.mxu1 %v4021_v35  ;;  %v2658_v35 = vperm.slane %v2651_v43, 0 }
 0x22e   : > { %2637 = vmatpush.bf16.msra.mxu3 %v4025_v38  ;;  %2848 = vmatpush.bf16.msrb.mxu2 %v4389_v15  ;;  %v2591_v38 = vperm.slane %v2429_v56, 0 }
 0x230   : > { %2612 = vmatpush.bf16.msra.mxu1 %v4013_v18 }
 0x232   : > { %2638 = vmatpush.bf16.msra.mxu3 %v4017_v22  ;;  %2849 = vmatpush.bf16.msrb.mxu2 %v4388_v13  ;;  %v2659_v22 = vperm.slane %v2651_v43, 1  ;;  %v4401_v13 = vld [vmem:[%s6255_s15 + $0x10] sm:$0xff] }
 0x234   : > { %2613 = vmatpush.bf16.msra.mxu1 %v4005_v29 }
 0x236   : > { %2639 = vmatpush.bf16.msra.mxu3 %v4009_v33  ;;  %2850 = vmatpush.bf16.msrb.mxu2 %v4387_v57  ;;  %v4399_v57 = vld [vmem:[%s6255_s15] sm:$0xff] }
 0x238   : > { %2614 = vmatpush.bf16.msra.mxu1 %v3997_v49 }
 0x23a   : > { %2640 = vmatpush.bf16.msra.mxu3 %v4001_v6  ;;  %2851 = vmatpush.bf16.msrb.mxu2 %v4386_v26 }
 0x23c   : > { %2615 = vmatpush.bf16.msra.mxu1 %v3989_v25  ;;  %v4395_v25 = vld [vmem:[%s6253_s13 + $0x20] sm:$0xff] }
 0x23e   : > { %2641 = vmatpush.bf16.msra.mxu3 %v3993_v52  ;;  %2852 = vmatpush.bf16.msrb.mxu2 %v4385_v1  ;;  %v4393_v52 = vld [vmem:[%s6253_s13 + $0x10] sm:$0xff] }
 0x240   : > { %2834 = vmatpush.bf16.msrb.mxu1 %v4382_v10  ;;  %v2737_v10 = vld [vmem:[%s6252_s12] sm:$0x1] }
 0x242   : > { %2853 = vmatpush.bf16.msrb.mxu2 %v4384_v34  ;;  %2927 = vmatpush.bf16.msrb.mxu3 %v4398_v42 }
 0x244   : > { %2835 = vmatpush.bf16.msrb.mxu1 %v4381_v12 }
 0x246   : > { %2854 = vmatpush.bf16.msrb.mxu2 %v4383_v60  ;;  %2928 = vmatpush.bf16.msrb.mxu3 %v4397_v32 }
 0x248   : > { %2836 = vmatpush.bf16.msrb.mxu1 %v4380_v30 }
 0x24a   : > { %2929 = vmatpush.bf16.msrb.mxu3 %v4396_v5 }
 0x24c   : > { %2837 = vmatpush.bf16.msrb.mxu1 %v4379_v14 }
 0x24e   : > { %2930 = vmatpush.bf16.msrb.mxu3 %v4395_v25 }
 0x250   : > { %2838 = vmatpush.bf16.msrb.mxu1 %v4378_v3 }
 0x252   : > { %2931 = vmatpush.bf16.msrb.mxu3 %v4394_v8 }
 0x254   : > { %2839 = vmatpush.bf16.msrb.mxu1 %v4377_v19  ;;  %v4400_v19 = vld [vmem:[%s6255_s15 + $0x8] sm:$0xff] }
 0x256   : > { %2932 = vmatpush.bf16.msrb.mxu3 %v4393_v52 }
 0x258   : > { %2840 = vmatpush.bf16.msrb.mxu1 %v4376_v41 }
 0x25a   : > { %2933 = vmatpush.bf16.msrb.mxu3 %v4392_v58 }
 0x25c   : > { %2841 = vmatpush.bf16.msrb.mxu1 %v4375_v27 }
 0x25e   : > { %2934 = vmatpush.bf16.msrb.mxu3 %v4391_v59 }
 0x28c   : > { %v2371_v61 = vpop.f32.mrf.mxu2 }
 0x28d   : > { %v2395_v36 = vpack.c.bf16 %v2371_v61, %v2371_v61  ;;  %v4406_v61 = vld [vmem:[%s6255_s15 + $0x38] sm:$0xff] }
 0x28f   : > { %2603 = vmatmul.bf16.vlgmr.msrb.gmra.mxu0 %v2395_v36  ;;  %2629 = vmatmul.bf16.vlgmr.msra.gmra.mxu2 %v2395_v36  ;;  %v4405_v36 = vld [vmem:[%s6255_s15 + $0x30] sm:$0xff] }
 0x290   : > { %2693 = vmatpush.bf16.msrb.mxu0 %v2671_v62 }
 0x29f   : > { %4050 = vmatmul.msk.bf16.vlgmr.msra.gmra.mxu0 %vm2662_vm13, %v2649_v0 }
 0x2a0   : > { %3007 = vmatpush.bf16.msra.mxu0 %v4406_v61 }
 0x2a4   : > { %v2391_v7 = vpop.f32.mrf.mxu3  ;;  %3008 = vmatpush.bf16.msra.mxu0 %v4405_v36 }
 0x2a5   : > { %v2396_v9 = vpack.c.bf16 %v2391_v7, %v2391_v7 }
 0x2a7   : > { %2616 = vmatmul.bf16.vlgmr.msra.gmra.mxu1 %v2396_v9  ;;  %2642 = vmatmul.bf16.vlgmr.msra.gmra.mxu3 %v2396_v9  ;;  %v4402_v9 = vld [vmem:[%s6255_s15 + $0x18] sm:$0xff] }
 0x2a8   : > { %3009 = vmatpush.bf16.msra.mxu0 %v4404_v63 }
 0x2af   : > { %4051 = vmatmul.msk.bf16.vlgmr.msrb.gmra.mxu0 %vm2662_vm13, %v2649_v0  ;;  %v4403_v0 = vld [vmem:[%s6255_s15 + $0x20] sm:$0xff] }
 0x2b0   : > { %3010 = vmatpush.bf16.msra.mxu0 %v4403_v0 }
 0x2b4   : > { %3011 = vmatpush.bf16.msra.mxu0 %v4402_v9 }
 0x2b8   : > { %3012 = vmatpush.bf16.msra.mxu0 %v4401_v13 }
 0x2bc   : > { %3013 = vmatpush.bf16.msra.mxu0 %v4400_v19 }
 0x2c0   : > { %3014 = vmatpush.bf16.msra.mxu0 %v4399_v57 }
 0x30c   : > { %v2604_v23 = vpop.f32.mrf.mxu0 }
 0x30d   : > { %v2605_v45 = vadd.f32 %v2604_v23, %v2591_v38  ;;  %v2878_v23 = vld [vmem:[%s6254_s14] sm:$0x1] }
 0x312   : > { %v2630_v2 = vpop.f32.mrf.mxu2 }
 0x313   : > { %v2631_v18 = vadd.f32 %v2630_v2, %v2592_v40 }
 0x314   : > { %v2606_v28 = vpop.f32.mrf.mxu0 }
 0x315   : > { %v2958_v28 = vld [vmem:[%s6256_s16] sm:$0x1] }
 0x31a   : > { %v2632_v39 = vpop.f32.mrf.mxu2 }
 0x31c   : > { %v2682_v20 = vpop.f32.mrf.mxu0 }
 0x31d   : > { %v2683_v53 = vadd.f32 %v2682_v20, %v2658_v35 }
 0x31f   : > { %4514 = vtanh.f32 %v2683_v53 }
 0x324   : > { %v2617_v54 = vpop.f32.mrf.mxu1  ;;  %v2684_v37 = vpop.f32.mrf.mxu0 }
 0x325   : > { %v2618_v11 = vadd.f32 %v2617_v54, %v2605_v45  ;;  %v4515_v47 = vpop.eup %4514 }
 0x327   : > { %4516 = vtanh.f32 %v2618_v11 }
 0x32a   : > { %v2643_v24 = vpop.f32.mrf.mxu3 }
 0x32b   : > { %v2644_v50 = vadd.f32 %v2643_v24, %v2631_v18 }
 0x32c   : > { %v2695_v17 = vpop.f32.mrf.mxu0  ;;  %v2619_v16 = vpop.f32.mrf.mxu1 }
 0x32d   : > { %v4517_v29 = vpop.eup %4516  ;;  %v2696_v33 = vadd.f32 %v2695_v17, %v2659_v22  ;;  %4518 = vtanh.f32 %v2644_v50 }
 0x32e   : > { %v2701_v48 = vadd.f32 %v4517_v29, %v4515_v47 }
 0x32f   : > { %4520 = vtanh.f32 %v2696_v33 }
 0x330   : > { %v2703_v21 = vpack.c.bf16 %v2701_v48, %v2701_v48 }
 0x332   : > { %2842 = vmatmul.bf16.vlgmr.msrb.gmra.mxu1 %v2703_v21  ;;  %v2645_v44 = vpop.f32.mrf.mxu3 }
 0x333   : > { %v4519_v49 = vpop.eup %4518 }
 0x334   : > { %v2697_v51 = vpop.f32.mrf.mxu0 }
 0x335   : > { %v4521_v6 = vpop.eup %4520 }
 0x336   : > { %v2702_v55 = vadd.f32 %v4521_v6, %v4519_v49 }
 0x338   : > { %v2704_v31 = vpack.c.bf16 %v2702_v55, %v2702_v55 }
 0x33a   : > { %2855 = vmatmul.bf16.vlgmr.msrb.gmra.mxu2 %v2704_v31 }
 0x3af   : > { %v2843_v62 = vpop.f32.mrf.mxu1 }
 0x3b0   : > { %v2844_v12 = vadd.f32 %v2843_v62, %v2737_v10 }
 0x3b7   : > { %v2845_v7 = vpop.f32.mrf.mxu1 }
 0x3bd   : > { %v2856_v4 = vpop.f32.mrf.mxu2 }
 0x3be   : > { %v2857_v30 = vadd.f32 %v2856_v4, %v2844_v12 }
 0x3c0   : > { %4522 = vtanh.f32 %v2857_v30 }
 0x3c5   : > { %v2858_v14 = vpop.f32.mrf.mxu2 }
 0x3c6   : > { %v4523_v15 = vpop.eup %4522 }
 0x3c7   : > { %v2861_v3 = vpack.c.bf16 %v4523_v15, %v4523_v15 }
 0x3c9   : > { %2935 = vmatmul.bf16.vlgmr.msrb.gmra.mxu3 %v2861_v3 }
 0x44c   : > { %v2936_v41 = vpop.f32.mrf.mxu3 }
 0x44d   : > { %v2937_v26 = vadd.f32 %v2936_v41, %v2878_v23 }
 0x44f   : > { %4524 = vtanh.f32 %v2937_v26 }
 0x454   : > { %v2938_v27 = vpop.f32.mrf.mxu3 }
 0x455   : > { %v4525_v1 = vpop.eup %4524 }
 0x456   : > { %v2941_v2 = vpack.c.bf16 %v4525_v1, %v4525_v1 }
 0x458   : > { %3015 = vmatmul.bf16.vlgmr.msra.gmra.mxu0 %v2941_v2 }
 0x4d5   : > { %v3016_v34 = vpop.f32.mrf.mxu0 }
 0x4d6   : > { %v3017_v60 = vadd.f32 %v3016_v34, %v2958_v28 }
 0x4d8   : > { %v3026_v39 = vsel %vm3020_vm14, -1e+30, %v3017_v60  ;;  %v3021_v42 = vsel %vm3020_vm14, %v3017_v60, -1e+30 }
 0x4d9   : > { %v3027_v43 = vsel %vm3022_vm15, %v3026_v39, -inf  ;;  %v3023_v56 = vsel %vm3022_vm15, %v3021_v42, -inf }
 0x4da   : > { %3028 = vmax.xlane.f32.xlu2 %v3027_v43  ;;  %3024 = vmax.xlane.f32.xlu1 %v3023_v56 }
 0x4dd   : > { %v3018_v20 = vpop.f32.mrf.mxu0 }
 0x54d   : > { %v3029_v32 = vpop.xlane.xlu2 %3028  ;;  %v3025_v35 = vpop.xlane.xlu1 %3024 }
 0x54e   : > { %v3030_v38 = vsel %vm3020_vm14, %v3025_v35, %v3029_v32 }
 0x54f   : > { %v3031_v53 = vsub.f32 %v3017_v60, %v3030_v38 }
 0x551   : > { %v3032_v45 = vmul.f32 1.442695, %v3031_v53 }
 0x553   : > { %4526 = vpow2.f32 %v3032_v45 }
 0x559   : > { %v4527_v54 = vpop.eup %4526 }
 0x55a   : > { %v3038_v37 = vsel %vm3020_vm14, 0.0, %v4527_v54  ;;  %v3034_v11 = vsel %vm3020_vm14, %v4527_v54, 0.0 }
 0x55b   : > { %v3039_v40 = vsel %vm3022_vm15, %v3038_v37, 0.0  ;;  %v3035_v18 = vsel %vm3022_vm15, %v3034_v11, 0.0 }
 0x55c   : > { %3040 = vadd.xlane.f32.xlu2 %v3039_v40  ;;  %3036 = vadd.xlane.f32.xlu0 %v3035_v18 }
 0x5cf   : > { %v3041_v22 = vpop.xlane.xlu2 %3040  ;;  %v3037_v24 = vpop.xlane.xlu0 %3036 }
 0x5d0   : > { %v3042_v50 = vsel %vm3020_vm14, %v3037_v24, %v3041_v22 }
 0x5d1   : > { %4528 = vrcp.f32 %v3042_v50  ;;  %v3054_v29 = vand.u32 2147483648, %v3042_v50  ;;  %v3052_v48 = vand.u32 2147483647, %v3042_v50  ;;  %vm3048_vm1 = vweird.f32 %v3042_v50 }
 0x5d3   : > { %v3055_v44 = vor.u32 1.1754944e-38, %v3054_v29  ;;  %vm3053_vm3 = vcmp.eq.f32.partialorder %v3052_v48, 8.507059e+37 }
 0x5d7   : > { %v4529_v47 = vpop.eup %4528 }
 0x5d8   : > { %v3044_v17 = vmul.f32 %v4529_v47, %v3042_v50  ;;  %vm3049_vm0 = vweird.f32 %v4529_v47 }
 0x5d9   : > { %vm3050_vm2 = vmor %vm3048_vm1, %vm3049_vm0 }
 0x5da   : > { %v3045_v16 = vsub.f32 1.0, %v3044_v17 }
 0x5dc   : > { %v3046_v33 = vmul.f32 %v4529_v47, %v3045_v16 }
 0x5de   : > { %v3047_v21 = vadd.f32 %v4529_v47, %v3046_v33 }
 0x5e0   : > { %v3051_v46 = vsel %vm3050_vm2, %v4529_v47, %v3047_v21 }
 0x5e1   : > { %v3056_v49 = vsel %vm3053_vm3, %v3055_v44, %v3051_v46 }
 0x5e2   : > { %v3057_v51 = vmul.f32 %v4527_v54, %v3056_v49 }
 0x5e4   : > { %3058 = vst.msk [vmem:[%s551_s19] sm:$0x1] %vm3022_vm15, %v3057_v51 }
 0x5e5   : > { %4557 = shalt.err (!%p4554_p3)
}
 0x5e6   : > { %4469 = dma.vmem_to_hbm [thread:$0]  (%p4724_p5), %s3071_s21, 16, %s3073_s23, %s3060_s0  }
 0x5e7 PF: > { %s6287_s26 = sld [smem:[#allocation8_spill]] }
 0x5e8   : > { %s6288_s20 = sld [smem:[#allocation6_spill]] }
 0x5ed   : > { %p4475_p4 = scmp.ge.s32.totalorder %s6287_s26, 2 }
 0x5ee   : > { %s3084_s2 = sand.u32 1, %s6288_s20  }
 0x5ef   : > { %p4472_p7 = pnand %p4475_p4, %p4728_p6  ;;  %s3085_s30 = scalar_lea.sflag [#allocation4], %s3084_s2 }
 0x5f1   : > { %p4473_p8 = pneg %p4472_p7 }
 0x5f3   : > { %4575 = dma.done.wait (%p4473_p8), %s3085_s30, 16  }
 0x5f4   : > { %4577 = vsyncadd (%p4473_p8), %s3085_s30, 4294967280  ;;  %s6290_s27 = sld [smem:[#allocation9_spill]]  ;;  %s6293_s24 = smov %s4584_s25 }
 0x5f5   : > { %s6291_s29 = sld [smem:[#allocation7_spill]] }
 0x5f6   : > { %s6292_s26 = sld [smem:[#allocation10_spill]] }
 0x5fa   : > { %p27_p9 = scmp.ge.s32.totalorder %s6290_s27, 4  }
 0x5fb   : > { %s6294_s25 = smov %s6291_s29 }
 0x5fc   :  { %29 = sbr.rel (!%p27_p9) target bundleno = 8 (0x8), region = 134 }
 0x601   :  { %3090 = vsyncpa [#allocation4], 1 }
 0x602   :  { %3092 = vsyncpa [#allocation4 + $0x1], 1 }

</bundles_post_ra>
